<compile_context>
chip_gen: v5e
topology: v5e:2x2
jax: 0.10.0
libtpu: 0.0.40
codegen_flags: <defaults>
</compile_context>

<pallas_src>
import jax
import jax.numpy as jnp
from jax.experimental import pallas as pl
from jax.experimental.pallas import tpu as pltpu


def _gru2_fc_kernel(x_ref, h_ref,
                    w0i_ref, b0i_ref, w0h_ref, b0h_ref,
                    w1_ref, b1_ref, fcw_ref, fcb_ref,
                    out_ref, hn_ref):
    """One batch tile. x_ref: (T*Bt, I) time-major rows; h_ref: (L, Bt, H)."""
    TB, _I = x_ref.shape
    _L, Bt, H = h_ref.shape
    T = TB // Bt
    H2 = 2 * H
    f32 = jnp.float32

    # ---- hoisted weight / bias loads (tiny; stay resident as values) ----------
    w0h = w0h_ref[...]            # (H, 3H)   layer-0 hidden weights  [r|z|n]
    b0h = b0h_ref[...]            # (1, 3H)   [0 | 0 | b_hn0]
    w1 = w1_ref[...]              # (2H, 4H)  layer-1 fused weights
    b1 = b1_ref[...]              # (1, 4H)   [b_r1 | b_z1 | b_in1 | b_hn1]

    # ---- layer-0 input projection: ONE MXU matmul for all timesteps & gates ---
    gi0 = (jnp.dot(x_ref[...].astype(f32), w0i_ref[...],
                   preferred_element_type=f32) + b0i_ref[...])        # (T*Bt, 3H)

    h0 = h_ref[0].astype(f32)     # (Bt, H)
    h1 = h_ref[1].astype(f32)     # (Bt, H)

    # ---- fused two-layer recurrence; unrolled over static (small) T -----------
    # (for T >~ 32 switch to lax.fori_loop(..., unroll=4/8) to bound live ranges)
    for t in range(T):
        gi = gi0[t * Bt:(t + 1) * Bt, :]                              # (Bt, 3H) contiguous rows

        # layer 0: single fused hidden matmul [r|z|n]
        gh = jnp.dot(h0, w0h, preferred_element_type=f32) + b0h      # (Bt, 3H)
        rz0 = jax.nn.sigmoid(gi[:, :H2] + gh[:, :H2])                # one EUP push for r|z
        r0 = rz0[:, :H]
        z0 = rz0[:, H:]
        n0 = jnp.tanh(gi[:, H2:] + r0 * gh[:, H2:])
        h0 = (1.0 - z0) * n0 + z0 * h0
        # TODO(synk): inter-layer dropout (p=0.2) omitted (eval-mode identity).

        # layer 1: single fused matmul -> lanes [r_pre | z_pre | gi_n | gh_n]
        g1 = (jnp.dot(jnp.concatenate([h0, h1], axis=-1), w1,
                      preferred_element_type=f32) + b1)               # (Bt, 4H)
        rz1 = jax.nn.sigmoid(g1[:, :H2])
        r1 = rz1[:, :H]
        z1 = rz1[:, H:]
        n1 = jnp.tanh(g1[:, H2:H2 + H] + r1 * g1[:, H2 + H:])
        h1 = (1.0 - z1) * n1 + z1 * h1

    hn_ref[0] = h0.astype(hn_ref.dtype)
    hn_ref[1] = h1.astype(hn_ref.dtype)
    # fc(out[:, -1]) of the top layer == fc(final hidden of layer 1)
    out_ref[...] = (jnp.dot(h1, fcw_ref[...], preferred_element_type=f32)
                    + fcb_ref[...]).astype(out_ref.dtype)


def gru_model_forward(x, h, params, *, batch_tile=1):
    """x: (B, T, in_size) batch_first, h: (L=2, B, H). Returns (out, h_n)."""
    B, T, I = x.shape
    L, _, H = h.shape
    assert L == 2, "kernel is specialized to n_layers=2"
    assert B % batch_tile == 0
    Bt = batch_tile
    nb = B // Bt
    w0i, b0i, w0h, b0h, w1, b1, fcw, fcb = params
    O = fcw.shape[1]

    # ---- wrapper-side layout plumbing (free XLA reshapes/transposes) ----------
    # x: (B, T, I) -> (nb, T*Bt, I), time-major rows (row = t*Bt + local_b) per tile
    x_tm = x.reshape(nb, Bt, T, I).transpose(0, 2, 1, 3).reshape(nb, T * Bt, I)
    # h: (L, B, H) -> (nb, L, Bt, H)
    h_t = h.transpose(1, 0, 2).reshape(nb, Bt, L, H).transpose(0, 2, 1, 3)

    full = lambda a: pl.BlockSpec(a.shape, lambda b: (0,) * a.ndim)

    out3, hn4 = pl.pallas_call(
        _gru2_fc_kernel,
        grid=(nb,),
        out_shape=(jax.ShapeDtypeStruct((nb, Bt, O), x.dtype),
                   jax.ShapeDtypeStruct((nb, L, Bt, H), x.dtype)),
        in_specs=[
            pl.BlockSpec((None, T * Bt, I), lambda b: (b, 0, 0)),
            pl.BlockSpec((None, L, Bt, H), lambda b: (b, 0, 0, 0)),
            full(w0i), full(b0i), full(w0h), full(b0h),
            full(w1), full(b1), full(fcw), full(fcb),
        ],
        out_specs=(
            pl.BlockSpec((None, Bt, O), lambda b: (b, 0, 0)),
            pl.BlockSpec((None, L, Bt, H), lambda b: (b, 0, 0, 0)),
        ),
        compiler_params=pltpu.CompilerParams(
            dimension_semantics=("parallel",),      # shards batch tiles across TCs (v7x)
            vmem_limit_bytes=32 * 1024 * 1024,       # safe on v5e/v6e (128 MiB) and v7x (64 MiB)
        ),
    )(x_tm, h_t, w0i, b0i, w0h, b0h, w1, b1, fcw, fcb)

    out = out3.reshape(B, O)
    hn = hn4.transpose(0, 2, 1, 3).reshape(B, L, H).transpose(1, 0, 2)
    return out, hn


def pack_gru_params(wih0, whh0, bih0, bhh0, wih1, whh1, bih1, bhh1, fcw, fcb, H):
    """PyTorch-layout GRU + Linear params -> fused kernel layout."""
    def gates(w):  # (3H, Din) -> (W_r^T, W_z^T, W_n^T), each (Din, H)
        return w[:H].T, w[H:2 * H].T, w[2 * H:].T

    i0r, i0z, i0n = gates(wih0)      # (I, H)
    h0r, h0z, h0n = gates(whh0)      # (H, H)
    i1r, i1z, i1n = gates(wih1)      # (H, H)
    h1r, h1z, h1n = gates(whh1)      # (H, H)

    # layer-0 input projection weights / summed biases, lane-packed [r|z|n]
    w0i = jnp.concatenate([i0r, i0z, i0n], axis=1)                         # (I, 3H)
    b0i = jnp.concatenate([bih0[:H] + bhh0[:H],
                           bih0[H:2 * H] + bhh0[H:2 * H],
                           bih0[2 * H:]])[None, :]                         # (1, 3H)
    # layer-0 hidden weights [r|z|n]; hidden bias only on the n gate
    w0h = jnp.concatenate([h0r, h0z, h0n], axis=1)                         # (H, 3H)
    b0h = jnp.concatenate([jnp.zeros((2 * H,), bhh0.dtype),
                           bhh0[2 * H:]])[None, :]                         # (1, 3H)

    # layer-1 fused matmul: LHS = [h0 | h1] (B, 2H); result lanes [r | z | gi_n | gh_n]
    zH = jnp.zeros((H, H), wih1.dtype)
    top = jnp.concatenate([i1r, i1z, i1n, zH], axis=1)                     # rows hit by h0
    bot = jnp.concatenate([h1r, h1z, zH, h1n], axis=1)                     # rows hit by h1
    w1 = jnp.concatenate([top, bot], axis=0)                               # (2H, 4H)
    b1 = jnp.concatenate([bih1[:H] + bhh1[:H],
                          bih1[H:2 * H] + bhh1[H:2 * H],
                          bih1[2 * H:], bhh1[2 * H:]])[None, :]            # (1, 4H)

    return (w0i, b0i, w0h, b0h, w1, b1, fcw.T, fcb[None, :])


def _ref_forward(x, h, pt_params, H):
    """Pure-JAX reference with PyTorch GRU semantics (eval mode)."""
    wih0, whh0, bih0, bhh0, wih1, whh1, bih1, bhh1, fcw, fcb = pt_params

    def cell(xt, hprev, wih, whh, bih, bhh):
        gi = xt @ wih.T + bih
        gh = hprev @ whh.T + bhh
        r = jax.nn.sigmoid(gi[:, :H] + gh[:, :H])
        z = jax.nn.sigmoid(gi[:, H:2 * H] + gh[:, H:2 * H])
        n = jnp.tanh(gi[:, 2 * H:] + r * gh[:, 2 * H:])
        return (1.0 - z) * n + z * hprev

    h0, h1 = h[0], h[1]
    T = x.shape[1]
    for t in range(T):
        h0 = cell(x[:, t, :], h0, wih0, whh0, bih0, bhh0)
        h1 = cell(h0, h1, wih1, whh1, bih1, bhh1)
    out = h1 @ fcw.T + fcb
    return out, jnp.stack([h0, h1])


if __name__ == "__main__":
    # Small shapes consistent with the module: n_hidden=16, n_layers=2, out_size=1.
    B, T, I, H, L, O = 2, 8, 8, 16, 2, 1

    key = jax.random.PRNGKey(0)
    keys = jax.random.split(key, 12)
    bound = 1.0 / jnp.sqrt(jnp.float32(H))

    def u(kk, shape):
        return jax.random.uniform(kk, shape, jnp.float32, -bound, bound)

    # PyTorch-layout parameters: weight_ih_l* (3H, Din), weight_hh_l* (3H, H), biases (3H,).
    wih0_pt = u(keys[0], (3 * H, I)); whh0_pt = u(keys[1], (3 * H, H))
    bih0_pt = u(keys[2], (3 * H,));   bhh0_pt = u(keys[3], (3 * H,))
    wih1_pt = u(keys[4], (3 * H, H)); whh1_pt = u(keys[5], (3 * H, H))
    bih1_pt = u(keys[6], (3 * H,));   bhh1_pt = u(keys[7], (3 * H,))
    fcw_pt  = u(keys[8], (O, H));     fcb_pt  = u(keys[9], (O,))

    params = pack_gru_params(wih0_pt, whh0_pt, bih0_pt, bhh0_pt,
                             wih1_pt, whh1_pt, bih1_pt, bhh1_pt,
                             fcw_pt, fcb_pt, H)

    x = jax.random.normal(keys[10], (B, T, I), jnp.float32)   # batch_first
    h_init = jnp.zeros((L, B, H), jnp.float32)                # init_hidden(batch_size)

    out, hn = gru_model_forward(x, h_init, params, batch_tile=1)
    jax.block_until_ready((out, hn))
    assert out.shape == (B, O) and hn.shape == (L, B, H)

    # Correctness check against a pure-JAX PyTorch-semantics reference (f32).
    ref_out, ref_hn = _ref_forward(
        x, h_init,
        (wih0_pt, whh0_pt, bih0_pt, bhh0_pt, wih1_pt, whh1_pt, bih1_pt, bhh1_pt,
         fcw_pt, fcb_pt), H)
    assert float(jnp.max(jnp.abs(out - ref_out))) < 1e-3
    assert float(jnp.max(jnp.abs(hn - ref_hn))) < 1e-3

    print("KERNEL_OK")
</pallas_src>

<mosaic_0001>
module attributes {stable_mosaic.version = 11 : i64} {
  func.func @_gru2_fc_kernel(%arg0: i32, %arg1: memref<1x8x8xf32, #tpu.memory_space<vmem>>, %arg2: memref<1x2x1x16xf32, #tpu.memory_space<vmem>>, %arg3: memref<8x48xf32, #tpu.memory_space<vmem>>, %arg4: memref<1x48xf32, #tpu.memory_space<vmem>>, %arg5: memref<16x48xf32, #tpu.memory_space<vmem>>, %arg6: memref<1x48xf32, #tpu.memory_space<vmem>>, %arg7: memref<32x64xf32, #tpu.memory_space<vmem>>, %arg8: memref<1x64xf32, #tpu.memory_space<vmem>>, %arg9: memref<16x1xf32, #tpu.memory_space<vmem>>, %arg10: memref<1x1xf32, #tpu.memory_space<vmem>>, %arg11: memref<1x1x1xf32, #tpu.memory_space<vmem>>, %arg12: memref<1x2x1x16xf32, #tpu.memory_space<vmem>>) attributes {dimension_semantics = [#tpu.dimension_semantics<parallel>], iteration_bounds = array<i64: 2>, scalar_prefetch = 0 : i64, scratch_operands = 0 : i64, tpu.core_type = #tpu.core_type<tc>, window_params = [{transform_indices = @transform_0, window_bounds = array<i64: 1, 8, 8>}, {transform_indices = @transform_1, window_bounds = array<i64: 1, 2, 1, 16>}, {pipeline_mode = #tpu.pipeline_mode<synchronous>, transform_indices = @transform_2, window_bounds = array<i64: 8, 48>}, {pipeline_mode = #tpu.pipeline_mode<synchronous>, transform_indices = @transform_3, window_bounds = array<i64: 1, 48>}, {pipeline_mode = #tpu.pipeline_mode<synchronous>, transform_indices = @transform_4, window_bounds = array<i64: 16, 48>}, {pipeline_mode = #tpu.pipeline_mode<synchronous>, transform_indices = @transform_5, window_bounds = array<i64: 1, 48>}, {pipeline_mode = #tpu.pipeline_mode<synchronous>, transform_indices = @transform_6, window_bounds = array<i64: 32, 64>}, {pipeline_mode = #tpu.pipeline_mode<synchronous>, transform_indices = @transform_7, window_bounds = array<i64: 1, 64>}, {pipeline_mode = #tpu.pipeline_mode<synchronous>, transform_indices = @transform_8, window_bounds = array<i64: 16, 1>}, {pipeline_mode = #tpu.pipeline_mode<synchronous>, transform_indices = @transform_9, window_bounds = array<i64: 1, 1>}, {transform_indices = @transform_10, window_bounds = array<i64: 1, 1, 1>}, {transform_indices = @transform_11, window_bounds = array<i64: 1, 2, 1, 16>}]} {
    %c0 = arith.constant 0 : index
    %c0_0 = arith.constant 0 : index
    %0 = vector.load %arg5[%c0, %c0_0] : memref<16x48xf32, #tpu.memory_space<vmem>>, vector<16x48xf32>
    %c0_1 = arith.constant 0 : index
    %c0_2 = arith.constant 0 : index
    %1 = vector.load %arg6[%c0_1, %c0_2] : memref<1x48xf32, #tpu.memory_space<vmem>>, vector<1x48xf32>
    %c0_3 = arith.constant 0 : index
    %c0_4 = arith.constant 0 : index
    %2 = vector.load %arg7[%c0_3, %c0_4] : memref<32x64xf32, #tpu.memory_space<vmem>>, vector<32x64xf32>
    %c0_5 = arith.constant 0 : index
    %c0_6 = arith.constant 0 : index
    %3 = vector.load %arg8[%c0_5, %c0_6] : memref<1x64xf32, #tpu.memory_space<vmem>>, vector<1x64xf32>
    %c0_7 = arith.constant 0 : index
    %c0_8 = arith.constant 0 : index
    %c0_9 = arith.constant 0 : index
    %4 = vector.load %arg1[%c0_7, %c0_8, %c0_9] : memref<1x8x8xf32, #tpu.memory_space<vmem>>, vector<1x8x8xf32>
    %5 = vector.shape_cast %4 : vector<1x8x8xf32> to vector<8x8xf32>
    %c0_10 = arith.constant 0 : index
    %c0_11 = arith.constant 0 : index
    %6 = vector.load %arg3[%c0_10, %c0_11] : memref<8x48xf32, #tpu.memory_space<vmem>>, vector<8x48xf32>
    %cst = arith.constant dense<0.000000e+00> : vector<8x48xf32>
    %7 = tpu.matmul %5, %6, %cst {dimension_numbers = #tpu.dot_dimension_numbers<[1], [0], [0], [1], [0, 0, 1, 1], [], []>} : vector<8x8xf32>, vector<8x48xf32>, vector<8x48xf32> -> vector<8x48xf32>
    %c0_12 = arith.constant 0 : index
    %c0_13 = arith.constant 0 : index
    %8 = vector.load %arg4[%c0_12, %c0_13] : memref<1x48xf32, #tpu.memory_space<vmem>>, vector<1x48xf32>
    %9 = vector.broadcast %8 : vector<1x48xf32> to vector<8x48xf32>
    %10 = arith.addf %7, %9 : vector<8x48xf32>
    %c0_14 = arith.constant 0 : index
    %c0_15 = arith.constant 0 : index
    %c0_16 = arith.constant 0 : index
    %c0_17 = arith.constant 0 : index
    %11 = vector.load %arg2[%c0_14, %c0_15, %c0_16, %c0_17] : memref<1x2x1x16xf32, #tpu.memory_space<vmem>>, vector<1x1x1x16xf32>
    %12 = vector.shape_cast %11 : vector<1x1x1x16xf32> to vector<1x16xf32>
    %c0_18 = arith.constant 0 : index
    %c1 = arith.constant 1 : index
    %c0_19 = arith.constant 0 : index
    %c0_20 = arith.constant 0 : index
    %13 = vector.load %arg2[%c0_18, %c1, %c0_19, %c0_20] : memref<1x2x1x16xf32, #tpu.memory_space<vmem>>, vector<1x1x1x16xf32>
    %14 = vector.shape_cast %13 : vector<1x1x1x16xf32> to vector<1x16xf32>
    %15 = vector.extract_strided_slice %10 {offsets = [0, 0], sizes = [1, 48], strides = [1, 1]} : vector<8x48xf32> to vector<1x48xf32>
    %cst_21 = arith.constant dense<0.000000e+00> : vector<1x48xf32>
    %16 = tpu.matmul %12, %0, %cst_21 {dimension_numbers = #tpu.dot_dimension_numbers<[1], [0], [0], [1], [0, 0, 1, 1], [], []>} : vector<1x16xf32>, vector<16x48xf32>, vector<1x48xf32> -> vector<1x48xf32>
    %17 = arith.addf %16, %1 : vector<1x48xf32>
    %18 = vector.extract_strided_slice %15 {offsets = [0, 0], sizes = [1, 32], strides = [1, 1]} : vector<1x48xf32> to vector<1x32xf32>
    %19 = vector.extract_strided_slice %17 {offsets = [0, 0], sizes = [1, 32], strides = [1, 1]} : vector<1x48xf32> to vector<1x32xf32>
    %20 = arith.addf %18, %19 : vector<1x32xf32>
    %21 = arith.negf %20 : vector<1x32xf32>
    %22 = math.exp %21 : vector<1x32xf32>
    %cst_22 = arith.constant 1.000000e+00 : f32
    %23 = vector.broadcast %cst_22 : f32 to vector<1x32xf32>
    %24 = arith.addf %23, %22 : vector<1x32xf32>
    %25 = arith.divf %23, %24 : vector<1x32xf32>
    %26 = vector.extract_strided_slice %25 {offsets = [0, 0], sizes = [1, 16], strides = [1, 1]} : vector<1x32xf32> to vector<1x16xf32>
    %27 = vector.extract_strided_slice %25 {offsets = [0, 16], sizes = [1, 16], strides = [1, 1]} : vector<1x32xf32> to vector<1x16xf32>
    %28 = vector.extract_strided_slice %15 {offsets = [0, 32], sizes = [1, 16], strides = [1, 1]} : vector<1x48xf32> to vector<1x16xf32>
    %29 = vector.extract_strided_slice %17 {offsets = [0, 32], sizes = [1, 16], strides = [1, 1]} : vector<1x48xf32> to vector<1x16xf32>
    %30 = arith.mulf %26, %29 : vector<1x16xf32>
    %31 = arith.addf %28, %30 : vector<1x16xf32>
    %32 = math.tanh %31 : vector<1x16xf32>
    %cst_23 = arith.constant 1.000000e+00 : f32
    %33 = vector.broadcast %cst_23 : f32 to vector<1x16xf32>
    %34 = arith.subf %33, %27 : vector<1x16xf32>
    %35 = arith.mulf %34, %32 : vector<1x16xf32>
    %36 = arith.mulf %27, %12 : vector<1x16xf32>
    %37 = arith.addf %35, %36 : vector<1x16xf32>
    %38 = tpu.concatenate %37, %14 in 1 : vector<1x16xf32>, vector<1x16xf32> -> vector<1x32xf32>
    %cst_24 = arith.constant dense<0.000000e+00> : vector<1x64xf32>
    %39 = tpu.matmul %38, %2, %cst_24 {dimension_numbers = #tpu.dot_dimension_numbers<[1], [0], [0], [1], [0, 0, 1, 1], [], []>} : vector<1x32xf32>, vector<32x64xf32>, vector<1x64xf32> -> vector<1x64xf32>
    %40 = arith.addf %39, %3 : vector<1x64xf32>
    %41 = vector.extract_strided_slice %40 {offsets = [0, 0], sizes = [1, 32], strides = [1, 1]} : vector<1x64xf32> to vector<1x32xf32>
    %42 = arith.negf %41 : vector<1x32xf32>
    %43 = math.exp %42 : vector<1x32xf32>
    %cst_25 = arith.constant 1.000000e+00 : f32
    %44 = vector.broadcast %cst_25 : f32 to vector<1x32xf32>
    %45 = arith.addf %44, %43 : vector<1x32xf32>
    %46 = arith.divf %44, %45 : vector<1x32xf32>
    %47 = vector.extract_strided_slice %46 {offsets = [0, 0], sizes = [1, 16], strides = [1, 1]} : vector<1x32xf32> to vector<1x16xf32>
    %48 = vector.extract_strided_slice %46 {offsets = [0, 16], sizes = [1, 16], strides = [1, 1]} : vector<1x32xf32> to vector<1x16xf32>
    %49 = vector.extract_strided_slice %40 {offsets = [0, 32], sizes = [1, 16], strides = [1, 1]} : vector<1x64xf32> to vector<1x16xf32>
    %50 = vector.extract_strided_slice %40 {offsets = [0, 48], sizes = [1, 16], strides = [1, 1]} : vector<1x64xf32> to vector<1x16xf32>
    %51 = arith.mulf %47, %50 : vector<1x16xf32>
    %52 = arith.addf %49, %51 : vector<1x16xf32>
    %53 = math.tanh %52 : vector<1x16xf32>
    %cst_26 = arith.constant 1.000000e+00 : f32
    %54 = vector.broadcast %cst_26 : f32 to vector<1x16xf32>
    %55 = arith.subf %54, %48 : vector<1x16xf32>
    %56 = arith.mulf %55, %53 : vector<1x16xf32>
    %57 = arith.mulf %48, %14 : vector<1x16xf32>
    %58 = arith.addf %56, %57 : vector<1x16xf32>
    %59 = vector.extract_strided_slice %10 {offsets = [1, 0], sizes = [1, 48], strides = [1, 1]} : vector<8x48xf32> to vector<1x48xf32>
    %cst_27 = arith.constant dense<0.000000e+00> : vector<1x48xf32>
    %60 = tpu.matmul %37, %0, %cst_27 {dimension_numbers = #tpu.dot_dimension_numbers<[1], [0], [0], [1], [0, 0, 1, 1], [], []>} : vector<1x16xf32>, vector<16x48xf32>, vector<1x48xf32> -> vector<1x48xf32>
    %61 = arith.addf %60, %1 : vector<1x48xf32>
    %62 = vector.extract_strided_slice %59 {offsets = [0, 0], sizes = [1, 32], strides = [1, 1]} : vector<1x48xf32> to vector<1x32xf32>
    %63 = vector.extract_strided_slice %61 {offsets = [0, 0], sizes = [1, 32], strides = [1, 1]} : vector<1x48xf32> to vector<1x32xf32>
    %64 = arith.addf %62, %63 : vector<1x32xf32>
    %65 = arith.negf %64 : vector<1x32xf32>
    %66 = math.exp %65 : vector<1x32xf32>
    %cst_28 = arith.constant 1.000000e+00 : f32
    %67 = vector.broadcast %cst_28 : f32 to vector<1x32xf32>
    %68 = arith.addf %67, %66 : vector<1x32xf32>
    %69 = arith.divf %67, %68 : vector<1x32xf32>
    %70 = vector.extract_strided_slice %69 {offsets = [0, 0], sizes = [1, 16], strides = [1, 1]} : vector<1x32xf32> to vector<1x16xf32>
    %71 = vector.extract_strided_slice %69 {offsets = [0, 16], sizes = [1, 16], strides = [1, 1]} : vector<1x32xf32> to vector<1x16xf32>
    %72 = vector.extract_strided_slice %59 {offsets = [0, 32], sizes = [1, 16], strides = [1, 1]} : vector<1x48xf32> to vector<1x16xf32>
    %73 = vector.extract_strided_slice %61 {offsets = [0, 32], sizes = [1, 16], strides = [1, 1]} : vector<1x48xf32> to vector<1x16xf32>
    %74 = arith.mulf %70, %73 : vector<1x16xf32>
    %75 = arith.addf %72, %74 : vector<1x16xf32>
    %76 = math.tanh %75 : vector<1x16xf32>
    %cst_29 = arith.constant 1.000000e+00 : f32
    %77 = vector.broadcast %cst_29 : f32 to vector<1x16xf32>
    %78 = arith.subf %77, %71 : vector<1x16xf32>
    %79 = arith.mulf %78, %76 : vector<1x16xf32>
    %80 = arith.mulf %71, %37 : vector<1x16xf32>
    %81 = arith.addf %79, %80 : vector<1x16xf32>
    %82 = tpu.concatenate %81, %58 in 1 : vector<1x16xf32>, vector<1x16xf32> -> vector<1x32xf32>
    %cst_30 = arith.constant dense<0.000000e+00> : vector<1x64xf32>
    %83 = tpu.matmul %82, %2, %cst_30 {dimension_numbers = #tpu.dot_dimension_numbers<[1], [0], [0], [1], [0, 0, 1, 1], [], []>} : vector<1x32xf32>, vector<32x64xf32>, vector<1x64xf32> -> vector<1x64xf32>
    %84 = arith.addf %83, %3 : vector<1x64xf32>
    %85 = vector.extract_strided_slice %84 {offsets = [0, 0], sizes = [1, 32], strides = [1, 1]} : vector<1x64xf32> to vector<1x32xf32>
    %86 = arith.negf %85 : vector<1x32xf32>
    %87 = math.exp %86 : vector<1x32xf32>
    %cst_31 = arith.constant 1.000000e+00 : f32
    %88 = vector.broadcast %cst_31 : f32 to vector<1x32xf32>
    %89 = arith.addf %88, %87 : vector<1x32xf32>
    %90 = arith.divf %88, %89 : vector<1x32xf32>
    %91 = vector.extract_strided_slice %90 {offsets = [0, 0], sizes = [1, 16], strides = [1, 1]} : vector<1x32xf32> to vector<1x16xf32>
    %92 = vector.extract_strided_slice %90 {offsets = [0, 16], sizes = [1, 16], strides = [1, 1]} : vector<1x32xf32> to vector<1x16xf32>
    %93 = vector.extract_strided_slice %84 {offsets = [0, 32], sizes = [1, 16], strides = [1, 1]} : vector<1x64xf32> to vector<1x16xf32>
    %94 = vector.extract_strided_slice %84 {offsets = [0, 48], sizes = [1, 16], strides = [1, 1]} : vector<1x64xf32> to vector<1x16xf32>
    %95 = arith.mulf %91, %94 : vector<1x16xf32>
    %96 = arith.addf %93, %95 : vector<1x16xf32>
    %97 = math.tanh %96 : vector<1x16xf32>
    %cst_32 = arith.constant 1.000000e+00 : f32
    %98 = vector.broadcast %cst_32 : f32 to vector<1x16xf32>
    %99 = arith.subf %98, %92 : vector<1x16xf32>
    %100 = arith.mulf %99, %97 : vector<1x16xf32>
    %101 = arith.mulf %92, %58 : vector<1x16xf32>
    %102 = arith.addf %100, %101 : vector<1x16xf32>
    %103 = vector.extract_strided_slice %10 {offsets = [2, 0], sizes = [1, 48], strides = [1, 1]} : vector<8x48xf32> to vector<1x48xf32>
    %cst_33 = arith.constant dense<0.000000e+00> : vector<1x48xf32>
    %104 = tpu.matmul %81, %0, %cst_33 {dimension_numbers = #tpu.dot_dimension_numbers<[1], [0], [0], [1], [0, 0, 1, 1], [], []>} : vector<1x16xf32>, vector<16x48xf32>, vector<1x48xf32> -> vector<1x48xf32>
    %105 = arith.addf %104, %1 : vector<1x48xf32>
    %106 = vector.extract_strided_slice %103 {offsets = [0, 0], sizes = [1, 32], strides = [1, 1]} : vector<1x48xf32> to vector<1x32xf32>
    %107 = vector.extract_strided_slice %105 {offsets = [0, 0], sizes = [1, 32], strides = [1, 1]} : vector<1x48xf32> to vector<1x32xf32>
    %108 = arith.addf %106, %107 : vector<1x32xf32>
    %109 = arith.negf %108 : vector<1x32xf32>
    %110 = math.exp %109 : vector<1x32xf32>
    %cst_34 = arith.constant 1.000000e+00 : f32
    %111 = vector.broadcast %cst_34 : f32 to vector<1x32xf32>
    %112 = arith.addf %111, %110 : vector<1x32xf32>
    %113 = arith.divf %111, %112 : vector<1x32xf32>
    %114 = vector.extract_strided_slice %113 {offsets = [0, 0], sizes = [1, 16], strides = [1, 1]} : vector<1x32xf32> to vector<1x16xf32>
    %115 = vector.extract_strided_slice %113 {offsets = [0, 16], sizes = [1, 16], strides = [1, 1]} : vector<1x32xf32> to vector<1x16xf32>
    %116 = vector.extract_strided_slice %103 {offsets = [0, 32], sizes = [1, 16], strides = [1, 1]} : vector<1x48xf32> to vector<1x16xf32>
    %117 = vector.extract_strided_slice %105 {offsets = [0, 32], sizes = [1, 16], strides = [1, 1]} : vector<1x48xf32> to vector<1x16xf32>
    %118 = arith.mulf %114, %117 : vector<1x16xf32>
    %119 = arith.addf %116, %118 : vector<1x16xf32>
    %120 = math.tanh %119 : vector<1x16xf32>
    %cst_35 = arith.constant 1.000000e+00 : f32
    %121 = vector.broadcast %cst_35 : f32 to vector<1x16xf32>
    %122 = arith.subf %121, %115 : vector<1x16xf32>
    %123 = arith.mulf %122, %120 : vector<1x16xf32>
    %124 = arith.mulf %115, %81 : vector<1x16xf32>
    %125 = arith.addf %123, %124 : vector<1x16xf32>
    %126 = tpu.concatenate %125, %102 in 1 : vector<1x16xf32>, vector<1x16xf32> -> vector<1x32xf32>
    %cst_36 = arith.constant dense<0.000000e+00> : vector<1x64xf32>
    %127 = tpu.matmul %126, %2, %cst_36 {dimension_numbers = #tpu.dot_dimension_numbers<[1], [0], [0], [1], [0, 0, 1, 1], [], []>} : vector<1x32xf32>, vector<32x64xf32>, vector<1x64xf32> -> vector<1x64xf32>
    %128 = arith.addf %127, %3 : vector<1x64xf32>
    %129 = vector.extract_strided_slice %128 {offsets = [0, 0], sizes = [1, 32], strides = [1, 1]} : vector<1x64xf32> to vector<1x32xf32>
    %130 = arith.negf %129 : vector<1x32xf32>
    %131 = math.exp %130 : vector<1x32xf32>
    %cst_37 = arith.constant 1.000000e+00 : f32
    %132 = vector.broadcast %cst_37 : f32 to vector<1x32xf32>
    %133 = arith.addf %132, %131 : vector<1x32xf32>
    %134 = arith.divf %132, %133 : vector<1x32xf32>
    %135 = vector.extract_strided_slice %134 {offsets = [0, 0], sizes = [1, 16], strides = [1, 1]} : vector<1x32xf32> to vector<1x16xf32>
    %136 = vector.extract_strided_slice %134 {offsets = [0, 16], sizes = [1, 16], strides = [1, 1]} : vector<1x32xf32> to vector<1x16xf32>
    %137 = vector.extract_strided_slice %128 {offsets = [0, 32], sizes = [1, 16], strides = [1, 1]} : vector<1x64xf32> to vector<1x16xf32>
    %138 = vector.extract_strided_slice %128 {offsets = [0, 48], sizes = [1, 16], strides = [1, 1]} : vector<1x64xf32> to vector<1x16xf32>
    %139 = arith.mulf %135, %138 : vector<1x16xf32>
    %140 = arith.addf %137, %139 : vector<1x16xf32>
    %141 = math.tanh %140 : vector<1x16xf32>
    %cst_38 = arith.constant 1.000000e+00 : f32
    %142 = vector.broadcast %cst_38 : f32 to vector<1x16xf32>
    %143 = arith.subf %142, %136 : vector<1x16xf32>
    %144 = arith.mulf %143, %141 : vector<1x16xf32>
    %145 = arith.mulf %136, %102 : vector<1x16xf32>
    %146 = arith.addf %144, %145 : vector<1x16xf32>
    %147 = vector.extract_strided_slice %10 {offsets = [3, 0], sizes = [1, 48], strides = [1, 1]} : vector<8x48xf32> to vector<1x48xf32>
    %cst_39 = arith.constant dense<0.000000e+00> : vector<1x48xf32>
    %148 = tpu.matmul %125, %0, %cst_39 {dimension_numbers = #tpu.dot_dimension_numbers<[1], [0], [0], [1], [0, 0, 1, 1], [], []>} : vector<1x16xf32>, vector<16x48xf32>, vector<1x48xf32> -> vector<1x48xf32>
    %149 = arith.addf %148, %1 : vector<1x48xf32>
    %150 = vector.extract_strided_slice %147 {offsets = [0, 0], sizes = [1, 32], strides = [1, 1]} : vector<1x48xf32> to vector<1x32xf32>
    %151 = vector.extract_strided_slice %149 {offsets = [0, 0], sizes = [1, 32], strides = [1, 1]} : vector<1x48xf32> to vector<1x32xf32>
    %152 = arith.addf %150, %151 : vector<1x32xf32>
    %153 = arith.negf %152 : vector<1x32xf32>
    %154 = math.exp %153 : vector<1x32xf32>
    %cst_40 = arith.constant 1.000000e+00 : f32
    %155 = vector.broadcast %cst_40 : f32 to vector<1x32xf32>
    %156 = arith.addf %155, %154 : vector<1x32xf32>
    %157 = arith.divf %155, %156 : vector<1x32xf32>
    %158 = vector.extract_strided_slice %157 {offsets = [0, 0], sizes = [1, 16], strides = [1, 1]} : vector<1x32xf32> to vector<1x16xf32>
    %159 = vector.extract_strided_slice %157 {offsets = [0, 16], sizes = [1, 16], strides = [1, 1]} : vector<1x32xf32> to vector<1x16xf32>
    %160 = vector.extract_strided_slice %147 {offsets = [0, 32], sizes = [1, 16], strides = [1, 1]} : vector<1x48xf32> to vector<1x16xf32>
    %161 = vector.extract_strided_slice %149 {offsets = [0, 32], sizes = [1, 16], strides = [1, 1]} : vector<1x48xf32> to vector<1x16xf32>
    %162 = arith.mulf %158, %161 : vector<1x16xf32>
    %163 = arith.addf %160, %162 : vector<1x16xf32>
    %164 = math.tanh %163 : vector<1x16xf32>
    %cst_41 = arith.constant 1.000000e+00 : f32
    %165 = vector.broadcast %cst_41 : f32 to vector<1x16xf32>
    %166 = arith.subf %165, %159 : vector<1x16xf32>
    %167 = arith.mulf %166, %164 : vector<1x16xf32>
    %168 = arith.mulf %159, %125 : vector<1x16xf32>
    %169 = arith.addf %167, %168 : vector<1x16xf32>
    %170 = tpu.concatenate %169, %146 in 1 : vector<1x16xf32>, vector<1x16xf32> -> vector<1x32xf32>
    %cst_42 = arith.constant dense<0.000000e+00> : vector<1x64xf32>
    %171 = tpu.matmul %170, %2, %cst_42 {dimension_numbers = #tpu.dot_dimension_numbers<[1], [0], [0], [1], [0, 0, 1, 1], [], []>} : vector<1x32xf32>, vector<32x64xf32>, vector<1x64xf32> -> vector<1x64xf32>
    %172 = arith.addf %171, %3 : vector<1x64xf32>
    %173 = vector.extract_strided_slice %172 {offsets = [0, 0], sizes = [1, 32], strides = [1, 1]} : vector<1x64xf32> to vector<1x32xf32>
    %174 = arith.negf %173 : vector<1x32xf32>
    %175 = math.exp %174 : vector<1x32xf32>
    %cst_43 = arith.constant 1.000000e+00 : f32
    %176 = vector.broadcast %cst_43 : f32 to vector<1x32xf32>
    %177 = arith.addf %176, %175 : vector<1x32xf32>
    %178 = arith.divf %176, %177 : vector<1x32xf32>
    %179 = vector.extract_strided_slice %178 {offsets = [0, 0], sizes = [1, 16], strides = [1, 1]} : vector<1x32xf32> to vector<1x16xf32>
    %180 = vector.extract_strided_slice %178 {offsets = [0, 16], sizes = [1, 16], strides = [1, 1]} : vector<1x32xf32> to vector<1x16xf32>
    %181 = vector.extract_strided_slice %172 {offsets = [0, 32], sizes = [1, 16], strides = [1, 1]} : vector<1x64xf32> to vector<1x16xf32>
    %182 = vector.extract_strided_slice %172 {offsets = [0, 48], sizes = [1, 16], strides = [1, 1]} : vector<1x64xf32> to vector<1x16xf32>
    %183 = arith.mulf %179, %182 : vector<1x16xf32>
    %184 = arith.addf %181, %183 : vector<1x16xf32>
    %185 = math.tanh %184 : vector<1x16xf32>
    %cst_44 = arith.constant 1.000000e+00 : f32
    %186 = vector.broadcast %cst_44 : f32 to vector<1x16xf32>
    %187 = arith.subf %186, %180 : vector<1x16xf32>
    %188 = arith.mulf %187, %185 : vector<1x16xf32>
    %189 = arith.mulf %180, %146 : vector<1x16xf32>
    %190 = arith.addf %188, %189 : vector<1x16xf32>
    %191 = vector.extract_strided_slice %10 {offsets = [4, 0], sizes = [1, 48], strides = [1, 1]} : vector<8x48xf32> to vector<1x48xf32>
    %cst_45 = arith.constant dense<0.000000e+00> : vector<1x48xf32>
    %192 = tpu.matmul %169, %0, %cst_45 {dimension_numbers = #tpu.dot_dimension_numbers<[1], [0], [0], [1], [0, 0, 1, 1], [], []>} : vector<1x16xf32>, vector<16x48xf32>, vector<1x48xf32> -> vector<1x48xf32>
    %193 = arith.addf %192, %1 : vector<1x48xf32>
    %194 = vector.extract_strided_slice %191 {offsets = [0, 0], sizes = [1, 32], strides = [1, 1]} : vector<1x48xf32> to vector<1x32xf32>
    %195 = vector.extract_strided_slice %193 {offsets = [0, 0], sizes = [1, 32], strides = [1, 1]} : vector<1x48xf32> to vector<1x32xf32>
    %196 = arith.addf %194, %195 : vector<1x32xf32>
    %197 = arith.negf %196 : vector<1x32xf32>
    %198 = math.exp %197 : vector<1x32xf32>
    %cst_46 = arith.constant 1.000000e+00 : f32
    %199 = vector.broadcast %cst_46 : f32 to vector<1x32xf32>
    %200 = arith.addf %199, %198 : vector<1x32xf32>
    %201 = arith.divf %199, %200 : vector<1x32xf32>
    %202 = vector.extract_strided_slice %201 {offsets = [0, 0], sizes = [1, 16], strides = [1, 1]} : vector<1x32xf32> to vector<1x16xf32>
    %203 = vector.extract_strided_slice %201 {offsets = [0, 16], sizes = [1, 16], strides = [1, 1]} : vector<1x32xf32> to vector<1x16xf32>
    %204 = vector.extract_strided_slice %191 {offsets = [0, 32], sizes = [1, 16], strides = [1, 1]} : vector<1x48xf32> to vector<1x16xf32>
    %205 = vector.extract_strided_slice %193 {offsets = [0, 32], sizes = [1, 16], strides = [1, 1]} : vector<1x48xf32> to vector<1x16xf32>
    %206 = arith.mulf %202, %205 : vector<1x16xf32>
    %207 = arith.addf %204, %206 : vector<1x16xf32>
    %208 = math.tanh %207 : vector<1x16xf32>
    %cst_47 = arith.constant 1.000000e+00 : f32
    %209 = vector.broadcast %cst_47 : f32 to vector<1x16xf32>
    %210 = arith.subf %209, %203 : vector<1x16xf32>
    %211 = arith.mulf %210, %208 : vector<1x16xf32>
    %212 = arith.mulf %203, %169 : vector<1x16xf32>
    %213 = arith.addf %211, %212 : vector<1x16xf32>
    %214 = tpu.concatenate %213, %190 in 1 : vector<1x16xf32>, vector<1x16xf32> -> vector<1x32xf32>
    %cst_48 = arith.constant dense<0.000000e+00> : vector<1x64xf32>
    %215 = tpu.matmul %214, %2, %cst_48 {dimension_numbers = #tpu.dot_dimension_numbers<[1], [0], [0], [1], [0, 0, 1, 1], [], []>} : vector<1x32xf32>, vector<32x64xf32>, vector<1x64xf32> -> vector<1x64xf32>
    %216 = arith.addf %215, %3 : vector<1x64xf32>
    %217 = vector.extract_strided_slice %216 {offsets = [0, 0], sizes = [1, 32], strides = [1, 1]} : vector<1x64xf32> to vector<1x32xf32>
    %218 = arith.negf %217 : vector<1x32xf32>
    %219 = math.exp %218 : vector<1x32xf32>
    %cst_49 = arith.constant 1.000000e+00 : f32
    %220 = vector.broadcast %cst_49 : f32 to vector<1x32xf32>
    %221 = arith.addf %220, %219 : vector<1x32xf32>
    %222 = arith.divf %220, %221 : vector<1x32xf32>
    %223 = vector.extract_strided_slice %222 {offsets = [0, 0], sizes = [1, 16], strides = [1, 1]} : vector<1x32xf32> to vector<1x16xf32>
    %224 = vector.extract_strided_slice %222 {offsets = [0, 16], sizes = [1, 16], strides = [1, 1]} : vector<1x32xf32> to vector<1x16xf32>
    %225 = vector.extract_strided_slice %216 {offsets = [0, 32], sizes = [1, 16], strides = [1, 1]} : vector<1x64xf32> to vector<1x16xf32>
    %226 = vector.extract_strided_slice %216 {offsets = [0, 48], sizes = [1, 16], strides = [1, 1]} : vector<1x64xf32> to vector<1x16xf32>
    %227 = arith.mulf %223, %226 : vector<1x16xf32>
    %228 = arith.addf %225, %227 : vector<1x16xf32>
    %229 = math.tanh %228 : vector<1x16xf32>
    %cst_50 = arith.constant 1.000000e+00 : f32
    %230 = vector.broadcast %cst_50 : f32 to vector<1x16xf32>
    %231 = arith.subf %230, %224 : vector<1x16xf32>
    %232 = arith.mulf %231, %229 : vector<1x16xf32>
    %233 = arith.mulf %224, %190 : vector<1x16xf32>
    %234 = arith.addf %232, %233 : vector<1x16xf32>
    %235 = vector.extract_strided_slice %10 {offsets = [5, 0], sizes = [1, 48], strides = [1, 1]} : vector<8x48xf32> to vector<1x48xf32>
    %cst_51 = arith.constant dense<0.000000e+00> : vector<1x48xf32>
    %236 = tpu.matmul %213, %0, %cst_51 {dimension_numbers = #tpu.dot_dimension_numbers<[1], [0], [0], [1], [0, 0, 1, 1], [], []>} : vector<1x16xf32>, vector<16x48xf32>, vector<1x48xf32> -> vector<1x48xf32>
    %237 = arith.addf %236, %1 : vector<1x48xf32>
    %238 = vector.extract_strided_slice %235 {offsets = [0, 0], sizes = [1, 32], strides = [1, 1]} : vector<1x48xf32> to vector<1x32xf32>
    %239 = vector.extract_strided_slice %237 {offsets = [0, 0], sizes = [1, 32], strides = [1, 1]} : vector<1x48xf32> to vector<1x32xf32>
    %240 = arith.addf %238, %239 : vector<1x32xf32>
    %241 = arith.negf %240 : vector<1x32xf32>
    %242 = math.exp %241 : vector<1x32xf32>
    %cst_52 = arith.constant 1.000000e+00 : f32
    %243 = vector.broadcast %cst_52 : f32 to vector<1x32xf32>
    %244 = arith.addf %243, %242 : vector<1x32xf32>
    %245 = arith.divf %243, %244 : vector<1x32xf32>
    %246 = vector.extract_strided_slice %245 {offsets = [0, 0], sizes = [1, 16], strides = [1, 1]} : vector<1x32xf32> to vector<1x16xf32>
    %247 = vector.extract_strided_slice %245 {offsets = [0, 16], sizes = [1, 16], strides = [1, 1]} : vector<1x32xf32> to vector<1x16xf32>
    %248 = vector.extract_strided_slice %235 {offsets = [0, 32], sizes = [1, 16], strides = [1, 1]} : vector<1x48xf32> to vector<1x16xf32>
    %249 = vector.extract_strided_slice %237 {offsets = [0, 32], sizes = [1, 16], strides = [1, 1]} : vector<1x48xf32> to vector<1x16xf32>
    %250 = arith.mulf %246, %249 : vector<1x16xf32>
    %251 = arith.addf %248, %250 : vector<1x16xf32>
    %252 = math.tanh %251 : vector<1x16xf32>
    %cst_53 = arith.constant 1.000000e+00 : f32
    %253 = vector.broadcast %cst_53 : f32 to vector<1x16xf32>
    %254 = arith.subf %253, %247 : vector<1x16xf32>
    %255 = arith.mulf %254, %252 : vector<1x16xf32>
    %256 = arith.mulf %247, %213 : vector<1x16xf32>
    %257 = arith.addf %255, %256 : vector<1x16xf32>
    %258 = tpu.concatenate %257, %234 in 1 : vector<1x16xf32>, vector<1x16xf32> -> vector<1x32xf32>
    %cst_54 = arith.constant dense<0.000000e+00> : vector<1x64xf32>
    %259 = tpu.matmul %258, %2, %cst_54 {dimension_numbers = #tpu.dot_dimension_numbers<[1], [0], [0], [1], [0, 0, 1, 1], [], []>} : vector<1x32xf32>, vector<32x64xf32>, vector<1x64xf32> -> vector<1x64xf32>
    %260 = arith.addf %259, %3 : vector<1x64xf32>
    %261 = vector.extract_strided_slice %260 {offsets = [0, 0], sizes = [1, 32], strides = [1, 1]} : vector<1x64xf32> to vector<1x32xf32>
    %262 = arith.negf %261 : vector<1x32xf32>
    %263 = math.exp %262 : vector<1x32xf32>
    %cst_55 = arith.constant 1.000000e+00 : f32
    %264 = vector.broadcast %cst_55 : f32 to vector<1x32xf32>
    %265 = arith.addf %264, %263 : vector<1x32xf32>
    %266 = arith.divf %264, %265 : vector<1x32xf32>
    %267 = vector.extract_strided_slice %266 {offsets = [0, 0], sizes = [1, 16], strides = [1, 1]} : vector<1x32xf32> to vector<1x16xf32>
    %268 = vector.extract_strided_slice %266 {offsets = [0, 16], sizes = [1, 16], strides = [1, 1]} : vector<1x32xf32> to vector<1x16xf32>
    %269 = vector.extract_strided_slice %260 {offsets = [0, 32], sizes = [1, 16], strides = [1, 1]} : vector<1x64xf32> to vector<1x16xf32>
    %270 = vector.extract_strided_slice %260 {offsets = [0, 48], sizes = [1, 16], strides = [1, 1]} : vector<1x64xf32> to vector<1x16xf32>
    %271 = arith.mulf %267, %270 : vector<1x16xf32>
    %272 = arith.addf %269, %271 : vector<1x16xf32>
    %273 = math.tanh %272 : vector<1x16xf32>
    %cst_56 = arith.constant 1.000000e+00 : f32
    %274 = vector.broadcast %cst_56 : f32 to vector<1x16xf32>
    %275 = arith.subf %274, %268 : vector<1x16xf32>
    %276 = arith.mulf %275, %273 : vector<1x16xf32>
    %277 = arith.mulf %268, %234 : vector<1x16xf32>
    %278 = arith.addf %276, %277 : vector<1x16xf32>
    %279 = vector.extract_strided_slice %10 {offsets = [6, 0], sizes = [1, 48], strides = [1, 1]} : vector<8x48xf32> to vector<1x48xf32>
    %cst_57 = arith.constant dense<0.000000e+00> : vector<1x48xf32>
    %280 = tpu.matmul %257, %0, %cst_57 {dimension_numbers = #tpu.dot_dimension_numbers<[1], [0], [0], [1], [0, 0, 1, 1], [], []>} : vector<1x16xf32>, vector<16x48xf32>, vector<1x48xf32> -> vector<1x48xf32>
    %281 = arith.addf %280, %1 : vector<1x48xf32>
    %282 = vector.extract_strided_slice %279 {offsets = [0, 0], sizes = [1, 32], strides = [1, 1]} : vector<1x48xf32> to vector<1x32xf32>
    %283 = vector.extract_strided_slice %281 {offsets = [0, 0], sizes = [1, 32], strides = [1, 1]} : vector<1x48xf32> to vector<1x32xf32>
    %284 = arith.addf %282, %283 : vector<1x32xf32>
    %285 = arith.negf %284 : vector<1x32xf32>
    %286 = math.exp %285 : vector<1x32xf32>
    %cst_58 = arith.constant 1.000000e+00 : f32
    %287 = vector.broadcast %cst_58 : f32 to vector<1x32xf32>
    %288 = arith.addf %287, %286 : vector<1x32xf32>
    %289 = arith.divf %287, %288 : vector<1x32xf32>
    %290 = vector.extract_strided_slice %289 {offsets = [0, 0], sizes = [1, 16], strides = [1, 1]} : vector<1x32xf32> to vector<1x16xf32>
    %291 = vector.extract_strided_slice %289 {offsets = [0, 16], sizes = [1, 16], strides = [1, 1]} : vector<1x32xf32> to vector<1x16xf32>
    %292 = vector.extract_strided_slice %279 {offsets = [0, 32], sizes = [1, 16], strides = [1, 1]} : vector<1x48xf32> to vector<1x16xf32>
    %293 = vector.extract_strided_slice %281 {offsets = [0, 32], sizes = [1, 16], strides = [1, 1]} : vector<1x48xf32> to vector<1x16xf32>
    %294 = arith.mulf %290, %293 : vector<1x16xf32>
    %295 = arith.addf %292, %294 : vector<1x16xf32>
    %296 = math.tanh %295 : vector<1x16xf32>
    %cst_59 = arith.constant 1.000000e+00 : f32
    %297 = vector.broadcast %cst_59 : f32 to vector<1x16xf32>
    %298 = arith.subf %297, %291 : vector<1x16xf32>
    %299 = arith.mulf %298, %296 : vector<1x16xf32>
    %300 = arith.mulf %291, %257 : vector<1x16xf32>
    %301 = arith.addf %299, %300 : vector<1x16xf32>
    %302 = tpu.concatenate %301, %278 in 1 : vector<1x16xf32>, vector<1x16xf32> -> vector<1x32xf32>
    %cst_60 = arith.constant dense<0.000000e+00> : vector<1x64xf32>
    %303 = tpu.matmul %302, %2, %cst_60 {dimension_numbers = #tpu.dot_dimension_numbers<[1], [0], [0], [1], [0, 0, 1, 1], [], []>} : vector<1x32xf32>, vector<32x64xf32>, vector<1x64xf32> -> vector<1x64xf32>
    %304 = arith.addf %303, %3 : vector<1x64xf32>
    %305 = vector.extract_strided_slice %304 {offsets = [0, 0], sizes = [1, 32], strides = [1, 1]} : vector<1x64xf32> to vector<1x32xf32>
    %306 = arith.negf %305 : vector<1x32xf32>
    %307 = math.exp %306 : vector<1x32xf32>
    %cst_61 = arith.constant 1.000000e+00 : f32
    %308 = vector.broadcast %cst_61 : f32 to vector<1x32xf32>
    %309 = arith.addf %308, %307 : vector<1x32xf32>
    %310 = arith.divf %308, %309 : vector<1x32xf32>
    %311 = vector.extract_strided_slice %310 {offsets = [0, 0], sizes = [1, 16], strides = [1, 1]} : vector<1x32xf32> to vector<1x16xf32>
    %312 = vector.extract_strided_slice %310 {offsets = [0, 16], sizes = [1, 16], strides = [1, 1]} : vector<1x32xf32> to vector<1x16xf32>
    %313 = vector.extract_strided_slice %304 {offsets = [0, 32], sizes = [1, 16], strides = [1, 1]} : vector<1x64xf32> to vector<1x16xf32>
    %314 = vector.extract_strided_slice %304 {offsets = [0, 48], sizes = [1, 16], strides = [1, 1]} : vector<1x64xf32> to vector<1x16xf32>
    %315 = arith.mulf %311, %314 : vector<1x16xf32>
    %316 = arith.addf %313, %315 : vector<1x16xf32>
    %317 = math.tanh %316 : vector<1x16xf32>
    %cst_62 = arith.constant 1.000000e+00 : f32
    %318 = vector.broadcast %cst_62 : f32 to vector<1x16xf32>
    %319 = arith.subf %318, %312 : vector<1x16xf32>
    %320 = arith.mulf %319, %317 : vector<1x16xf32>
    %321 = arith.mulf %312, %278 : vector<1x16xf32>
    %322 = arith.addf %320, %321 : vector<1x16xf32>
    %323 = vector.extract_strided_slice %10 {offsets = [7, 0], sizes = [1, 48], strides = [1, 1]} : vector<8x48xf32> to vector<1x48xf32>
    %cst_63 = arith.constant dense<0.000000e+00> : vector<1x48xf32>
    %324 = tpu.matmul %301, %0, %cst_63 {dimension_numbers = #tpu.dot_dimension_numbers<[1], [0], [0], [1], [0, 0, 1, 1], [], []>} : vector<1x16xf32>, vector<16x48xf32>, vector<1x48xf32> -> vector<1x48xf32>
    %325 = arith.addf %324, %1 : vector<1x48xf32>
    %326 = vector.extract_strided_slice %323 {offsets = [0, 0], sizes = [1, 32], strides = [1, 1]} : vector<1x48xf32> to vector<1x32xf32>
    %327 = vector.extract_strided_slice %325 {offsets = [0, 0], sizes = [1, 32], strides = [1, 1]} : vector<1x48xf32> to vector<1x32xf32>
    %328 = arith.addf %326, %327 : vector<1x32xf32>
    %329 = arith.negf %328 : vector<1x32xf32>
    %330 = math.exp %329 : vector<1x32xf32>
    %cst_64 = arith.constant 1.000000e+00 : f32
    %331 = vector.broadcast %cst_64 : f32 to vector<1x32xf32>
    %332 = arith.addf %331, %330 : vector<1x32xf32>
    %333 = arith.divf %331, %332 : vector<1x32xf32>
    %334 = vector.extract_strided_slice %333 {offsets = [0, 0], sizes = [1, 16], strides = [1, 1]} : vector<1x32xf32> to vector<1x16xf32>
    %335 = vector.extract_strided_slice %333 {offsets = [0, 16], sizes = [1, 16], strides = [1, 1]} : vector<1x32xf32> to vector<1x16xf32>
    %336 = vector.extract_strided_slice %323 {offsets = [0, 32], sizes = [1, 16], strides = [1, 1]} : vector<1x48xf32> to vector<1x16xf32>
    %337 = vector.extract_strided_slice %325 {offsets = [0, 32], sizes = [1, 16], strides = [1, 1]} : vector<1x48xf32> to vector<1x16xf32>
    %338 = arith.mulf %334, %337 : vector<1x16xf32>
    %339 = arith.addf %336, %338 : vector<1x16xf32>
    %340 = math.tanh %339 : vector<1x16xf32>
    %cst_65 = arith.constant 1.000000e+00 : f32
    %341 = vector.broadcast %cst_65 : f32 to vector<1x16xf32>
    %342 = arith.subf %341, %335 : vector<1x16xf32>
    %343 = arith.mulf %342, %340 : vector<1x16xf32>
    %344 = arith.mulf %335, %301 : vector<1x16xf32>
    %345 = arith.addf %343, %344 : vector<1x16xf32>
    %346 = tpu.concatenate %345, %322 in 1 : vector<1x16xf32>, vector<1x16xf32> -> vector<1x32xf32>
    %cst_66 = arith.constant dense<0.000000e+00> : vector<1x64xf32>
    %347 = tpu.matmul %346, %2, %cst_66 {dimension_numbers = #tpu.dot_dimension_numbers<[1], [0], [0], [1], [0, 0, 1, 1], [], []>} : vector<1x32xf32>, vector<32x64xf32>, vector<1x64xf32> -> vector<1x64xf32>
    %348 = arith.addf %347, %3 : vector<1x64xf32>
    %349 = vector.extract_strided_slice %348 {offsets = [0, 0], sizes = [1, 32], strides = [1, 1]} : vector<1x64xf32> to vector<1x32xf32>
    %350 = arith.negf %349 : vector<1x32xf32>
    %351 = math.exp %350 : vector<1x32xf32>
    %cst_67 = arith.constant 1.000000e+00 : f32
    %352 = vector.broadcast %cst_67 : f32 to vector<1x32xf32>
    %353 = arith.addf %352, %351 : vector<1x32xf32>
    %354 = arith.divf %352, %353 : vector<1x32xf32>
    %355 = vector.extract_strided_slice %354 {offsets = [0, 0], sizes = [1, 16], strides = [1, 1]} : vector<1x32xf32> to vector<1x16xf32>
    %356 = vector.extract_strided_slice %354 {offsets = [0, 16], sizes = [1, 16], strides = [1, 1]} : vector<1x32xf32> to vector<1x16xf32>
    %357 = vector.extract_strided_slice %348 {offsets = [0, 32], sizes = [1, 16], strides = [1, 1]} : vector<1x64xf32> to vector<1x16xf32>
    %358 = vector.extract_strided_slice %348 {offsets = [0, 48], sizes = [1, 16], strides = [1, 1]} : vector<1x64xf32> to vector<1x16xf32>
    %359 = arith.mulf %355, %358 : vector<1x16xf32>
    %360 = arith.addf %357, %359 : vector<1x16xf32>
    %361 = math.tanh %360 : vector<1x16xf32>
    %cst_68 = arith.constant 1.000000e+00 : f32
    %362 = vector.broadcast %cst_68 : f32 to vector<1x16xf32>
    %363 = arith.subf %362, %356 : vector<1x16xf32>
    %364 = arith.mulf %363, %361 : vector<1x16xf32>
    %365 = arith.mulf %356, %322 : vector<1x16xf32>
    %366 = arith.addf %364, %365 : vector<1x16xf32>
    %c0_69 = arith.constant 0 : index
    %c0_70 = arith.constant 0 : index
    %c0_71 = arith.constant 0 : index
    %c0_72 = arith.constant 0 : index
    %367 = vector.load %arg12[%c0_69, %c0_70, %c0_71, %c0_72] : memref<1x2x1x16xf32, #tpu.memory_space<vmem>>, vector<1x1x1x16xf32>
    %368 = vector.shape_cast %367 : vector<1x1x1x16xf32> to vector<1x16xf32>
    %369 = vector.shape_cast %345 : vector<1x16xf32> to vector<1x1x1x16xf32>
    tpu.vector_store %arg12[%c0_69, %c0_70, %c0_71, %c0_72], %369 {strides = array<i32>} : memref<1x2x1x16xf32, #tpu.memory_space<vmem>>, vector<1x1x1x16xf32>,
    %c0_73 = arith.constant 0 : index
    %c1_74 = arith.constant 1 : index
    %c0_75 = arith.constant 0 : index
    %c0_76 = arith.constant 0 : index
    %370 = vector.load %arg12[%c0_73, %c1_74, %c0_75, %c0_76] : memref<1x2x1x16xf32, #tpu.memory_space<vmem>>, vector<1x1x1x16xf32>
    %371 = vector.shape_cast %370 : vector<1x1x1x16xf32> to vector<1x16xf32>
    %372 = vector.shape_cast %366 : vector<1x16xf32> to vector<1x1x1x16xf32>
    tpu.vector_store %arg12[%c0_73, %c1_74, %c0_75, %c0_76], %372 {strides = array<i32>} : memref<1x2x1x16xf32, #tpu.memory_space<vmem>>, vector<1x1x1x16xf32>,
    %c0_77 = arith.constant 0 : index
    %c0_78 = arith.constant 0 : index
    %373 = vector.load %arg9[%c0_77, %c0_78] : memref<16x1xf32, #tpu.memory_space<vmem>>, vector<16x1xf32>
    %cst_79 = arith.constant dense<0.000000e+00> : vector<1x1xf32>
    %374 = tpu.matmul %366, %373, %cst_79 {dimension_numbers = #tpu.dot_dimension_numbers<[1], [0], [0], [1], [0, 0, 1, 1], [], []>} : vector<1x16xf32>, vector<16x1xf32>, vector<1x1xf32> -> vector<1x1xf32>
    %c0_80 = arith.constant 0 : index
    %c0_81 = arith.constant 0 : index
    %375 = vector.load %arg10[%c0_80, %c0_81] : memref<1x1xf32, #tpu.memory_space<vmem>>, vector<1x1xf32>
    %376 = arith.addf %374, %375 : vector<1x1xf32>
    %c0_82 = arith.constant 0 : index
    %c0_83 = arith.constant 0 : index
    %c0_84 = arith.constant 0 : index
    %377 = vector.load %arg11[%c0_82, %c0_83, %c0_84] : memref<1x1x1xf32, #tpu.memory_space<vmem>>, vector<1x1x1xf32>
    %378 = vector.shape_cast %377 : vector<1x1x1xf32> to vector<1x1xf32>
    %379 = vector.shape_cast %376 : vector<1x1xf32> to vector<1x1x1xf32>
    tpu.vector_store %arg11[%c0_82, %c0_83, %c0_84], %379 {strides = array<i32>} : memref<1x1x1xf32, #tpu.memory_space<vmem>>, vector<1x1x1xf32>,
    return
  }
  func.func @transform_0(%arg0: i32) -> (i32, i32, i32) {
    %c0_i32 = arith.constant 0 : i32
    %c0_i32_0 = arith.constant 0 : i32
    %c0_i32_1 = arith.constant 0 : i32
    return %arg0, %c0_i32, %c0_i32_0 : i32, i32, i32
  }
  func.func @transform_1(%arg0: i32) -> (i32, i32, i32, i32) {
    %c0_i32 = arith.constant 0 : i32
    %c0_i32_0 = arith.constant 0 : i32
    %c0_i32_1 = arith.constant 0 : i32
    %c0_i32_2 = arith.constant 0 : i32
    return %arg0, %c0_i32, %c0_i32_0, %c0_i32_1 : i32, i32, i32, i32
  }
  func.func @transform_2(%arg0: i32) -> (i32, i32) {
    %c0_i32 = arith.constant 0 : i32
    %c0_i32_0 = arith.constant 0 : i32
    %c0_i32_1 = arith.constant 0 : i32
    return %c0_i32, %c0_i32_0 : i32, i32
  }
  func.func @transform_3(%arg0: i32) -> (i32, i32) {
    %c0_i32 = arith.constant 0 : i32
    %c0_i32_0 = arith.constant 0 : i32
    %c0_i32_1 = arith.constant 0 : i32
    return %c0_i32, %c0_i32_0 : i32, i32
  }
  func.func @transform_4(%arg0: i32) -> (i32, i32) {
    %c0_i32 = arith.constant 0 : i32
    %c0_i32_0 = arith.constant 0 : i32
    %c0_i32_1 = arith.constant 0 : i32
    return %c0_i32, %c0_i32_0 : i32, i32
  }
  func.func @transform_5(%arg0: i32) -> (i32, i32) {
    %c0_i32 = arith.constant 0 : i32
    %c0_i32_0 = arith.constant 0 : i32
    %c0_i32_1 = arith.constant 0 : i32
    return %c0_i32, %c0_i32_0 : i32, i32
  }
  func.func @transform_6(%arg0: i32) -> (i32, i32) {
    %c0_i32 = arith.constant 0 : i32
    %c0_i32_0 = arith.constant 0 : i32
    %c0_i32_1 = arith.constant 0 : i32
    return %c0_i32, %c0_i32_0 : i32, i32
  }
  func.func @transform_7(%arg0: i32) -> (i32, i32) {
    %c0_i32 = arith.constant 0 : i32
    %c0_i32_0 = arith.constant 0 : i32
    %c0_i32_1 = arith.constant 0 : i32
    return %c0_i32, %c0_i32_0 : i32, i32
  }
  func.func @transform_8(%arg0: i32) -> (i32, i32) {
    %c0_i32 = arith.constant 0 : i32
    %c0_i32_0 = arith.constant 0 : i32
    %c0_i32_1 = arith.constant 0 : i32
    return %c0_i32, %c0_i32_0 : i32, i32
  }
  func.func @transform_9(%arg0: i32) -> (i32, i32) {
    %c0_i32 = arith.constant 0 : i32
    %c0_i32_0 = arith.constant 0 : i32
    %c0_i32_1 = arith.constant 0 : i32
    return %c0_i32, %c0_i32_0 : i32, i32
  }
  func.func @transform_10(%arg0: i32) -> (i32, i32, i32) {
    %c0_i32 = arith.constant 0 : i32
    %c0_i32_0 = arith.constant 0 : i32
    %c0_i32_1 = arith.constant 0 : i32
    return %arg0, %c0_i32, %c0_i32_0 : i32, i32, i32
  }
  func.func @transform_11(%arg0: i32) -> (i32, i32, i32, i32) {
    %c0_i32 = arith.constant 0 : i32
    %c0_i32_0 = arith.constant 0 : i32
    %c0_i32_1 = arith.constant 0 : i32
    %c0_i32_2 = arith.constant 0 : i32
    return %arg0, %c0_i32, %c0_i32_0, %c0_i32_1 : i32, i32, i32, i32
  }
}

</mosaic_0001>

<bundles_post_ra>
// kernel: tpu_custom_call.1
= control target key start
LH: loop header
LB: loop body
LE: loop exit
PB: predicated region body
PF: predicated region fallthrough
CT: control target
= control target key end

     0   :  { %s2767_s0 = inlined_call_operand.vmem [shape: f32[2,8,8], index: 0, kind: input, shape index: {}]   ;;  %s2768_s1 = inlined_call_operand.hbm [shape: f32[2,2,1,16], index: 1, kind: input, shape index: {}]   ;;  %s2769_s2 = inlined_call_operand.hbm [shape: f32[8,48], index: 2, kind: input, shape index: {}]   ;;  %s2770_s3 = inlined_call_operand.vmem [shape: f32[1,48], index: 3, kind: input, shape index: {}]   ;;  %s2771_s4 = inlined_call_operand.hbm [shape: f32[16,48], index: 4, kind: input, shape index: {}]   ;;  %s2772_s5 = inlined_call_operand.vmem [shape: f32[1,48], index: 5, kind: input, shape index: {}]   ;;  %s2773_s6 = inlined_call_operand.hbm [shape: f32[32,64], index: 6, kind: input, shape index: {}]   ;;  %s2774_s7 = inlined_call_operand.vmem [shape: f32[1,64], index: 7, kind: input, shape index: {}]   ;;  %s2775_s8 = inlined_call_operand.vmem [shape: f32[16,1], index: 8, kind: input, shape index: {}]   ;;  %s2776_s9 = inlined_call_operand.<no memory space> [shape: f32[1,1], index: 9, kind: input, shape index: {}]   ;;  %s2777_s10 = inlined_call_operand.vmem [shape: f32[2,1,1], index: 10, kind: output, shape index: {0}]   ;;  %s2778_s11 = inlined_call_operand.hbm [shape: f32[2,2,1,16], index: 11, kind: output, shape index: {1}]  }
   0x1   :  { %2779 = sst [smem:[#allocation17_spill]] %s2769_s2  ;;  %v17_v0 = vstv %s2776_s9 }
   0x2   :  { %2780 = sst [smem:[#allocation18_spill]] %s2771_s4  ;;  %18 = vst [vmem:[#allocation2] sm:$0x1] %v17_v0 }
   0x3   :  { %2781 = sst [smem:[#allocation19_spill]] %s2773_s6 }
   0x4   :  { %19 = vsyncpa [#allocation4], 0 }
   0x5   :  { %21 = vsyncpa [#allocation4 + $0x1], 0 }
   0x6   :  { %22 = vsyncpa [#allocation7], 0 }
   0x7   :  { %23 = vsyncpa [#allocation10], 0 }
   0x8   :  { %24 = vsyncpa [#allocation5], 0 }
   0x9   :  { %26 = vsyncpa [#allocation5 + $0x1], 0  ;;  %s2330_s19 = smov 0   ;;  %s2332_s20 = smov 0  }
   0xa   :  { %s2334_s21 = smov 0   ;;  %s2336_s22 = smov 0  }
   0xb LB: > { %s2351_s9 = sadd.s32 4294967295, %s2252_s22   ;;  %s1815_s23 = sadd.s32 4294967294, %s2252_s22   ;;  %s2252_s22 = sphi %s2336_s22, %s2797_s22   ;;  %s2248_s21 = sphi %s2334_s21, %s2796_s21   ;;  %s2244_s20 = sphi %s2332_s20, %s2795_s20   ;;  %s2240_s19 = sphi %s2330_s19, %s2794_s19  }
   0xc   : > { %p78_p0 = scmp.ne.s32.totalorder %s2244_s20, %s2240_s19  ;;  %p79_p1 = scmp.eq.s32.totalorder %s2351_s9, 0 }
   0xd   : > { %p296_p2 = scmp.eq.s32.totalorder %s2351_s9, 1  ;;  %p302_p3 = scmp.eq.s32.totalorder %s1815_s23, 1 }
   0xe   : > { %p2360_p4 = por %p79_p1, %p78_p0  ;;  %p1816_p5 = scmp.ge.s32.totalorder %s2252_s22, 1 }
   0xf   : > { %p2365_p6 = por %p302_p3, %p78_p0  ;;  %p309_p7 = scmp.lt.s32.totalorder %s2252_s22, 3 }
  0x10   : > { %s2784_s2 = sld [smem:[#allocation17_spill]]  ;;  %s2254_s30 = smov [#allocation6]  }
  0x11   : > { %p2373_p8 = pnand %p1816_p5, %p309_p7  ;;  %s323_s12 = sshll.u32 %s2254_s30, 4  ;;  %s324_s12 = int_to_ptr.vmem [resolvable:$true] %s323_s12 }
  0x12   : > { %s2786_s4 = sld [smem:[#allocation18_spill]]  ;;  %s2255_s17 = smov [#allocation8]  }
  0x13   : > { %p1886_p10 = pneg %p2373_p8  ;;  %s337_s18 = sshll.u32 %s2255_s17, 4  ;;  %s338_s18 = int_to_ptr.vmem [resolvable:$true] %s337_s18 }
  0x14   : > { %s2256_s23 = smov 128   ;;  %s2257_s26 = smov 8  }
  0x15   : > { %p2385_p11 = pnand %p1886_p10, %p79_p1  ;;  %s2788_s6 = sld [smem:[#allocation19_spill]] }
  0x16   : > { %s321_s28 = sshll.u32 %s2784_s2, 4  ;;  %s2258_s14 = smov [#allocation9]   ;;  %s322_s28 = int_to_ptr.hbm [resolvable:$true] %s321_s28 }
  0x17   : > { %1889 = dma.hbm_to_vmem [thread:$0]  (!%p2385_p11), %s322_s28, 128, %s324_s12, [#allocation7]  }
  0x18   : > { %s335_s15 = sshll.u32 %s2786_s4, 4  ;;  %s354_s17 = sshll.u32 %s2258_s14, 4  ;;  %s336_s15 = int_to_ptr.hbm [resolvable:$true] %s335_s15  ;;  %s355_s17 = int_to_ptr.vmem [resolvable:$true] %s354_s17 }
  0x19   : > { %1892 = dma.hbm_to_vmem [thread:$0]  (!%p2385_p11), %s336_s15, 256, %s338_s18, [#allocation7], %s2256_s23, %s2256_s23, %s2257_s26  }
  0x1a   : > { %s2399_s28 = sadd.s32 1, %s2252_s22   ;;  %s65_s2 = sadd.s32 1, %s2248_s21 }
  0x1b   : > { %s352_s13 = sshll.u32 %s2788_s6, 4  ;;  %s62_s12 = ssub.s32 %s2252_s22, %s2399_s28  ;;  %s353_s13 = int_to_ptr.hbm [resolvable:$true] %s352_s13 }
  0x1c   : > { %1895 = dma.hbm_to_vmem [thread:$0]  (!%p2385_p11), %s353_s13, 512, %s355_s17, [#allocation10], %s2256_s23, %s2256_s23, %s2257_s26  }
  0x1d   : > { %p63_p12 = scmp.eq.s32.totalorder %s62_s12, 0  ;;  %p72_p13 = scmp.ne.s32.totalorder %s2248_s21, %s2244_s20 }
  0x1e   : > { %p73_p0 = scmp.eq.s32.totalorder %s2252_s22, 0  ;;  %p1907_p3 = scmp.lt.s32.totalorder %s2252_s22, 2 }
  0x1f   : > { %s2409_s15 = scalar_select %p63_p12, %s2248_s21, %s65_s2  }
  0x20   : > { %p74_p5 = por %p73_p0, %p72_p13  ;;  %p2413_p7 = por %p296_p2, %p72_p13 }
  0x21   : > { %2789 = sst [smem:[#allocation16_spill]] %s2409_s15  ;;  %s384_s16 = sand.u32 1, %s2248_s21  }
  0x22   : > { %s1822_s23 = sshll.u32 %s2252_s22, 1  ;;  %s1821_s26 = sshll.u32 %s384_s16, 1 }
  0x23   : > { %s392_s13 = scalar_lea.hbm %s2768_s1, %s1822_s23  ;;  %s388_s17 = scalar_lea.vmem [#allocation3], %s1821_s26 }
  0x24   : > { %s393_s14 = sshll.u32 %s392_s13, 4  ;;  %s395_s12 = sshll.u32 %s388_s17, 4  ;;  %s394_s14 = int_to_ptr.hbm [resolvable:$true] %s393_s14  ;;  %s396_s12 = int_to_ptr.vmem [resolvable:$true] %s395_s12 }
  0x25   : > { %p2424_p10 = pnand %p1907_p3, %p74_p5  ;;  %s385_s4 = scalar_lea.sflag [#allocation4], %s384_s16 }
  0x26   : > { %s2148_s6 = sshra.s32 %s394_s14, 4  ;;  %s2155_s27 = scalar_lea.hbm %s2768_s1, 4  ;;  %s2149_s6 = int_to_ptr.hbm [resolvable:$true] %s2148_s6 }
  0x27   : > { %s2150_s15 = scalar_lea.hbm %s2149_s6, 2  ;;  %p2152_p11 = pneg %p2424_p10 }
  0x28   : > { %p2151_p2 = scmp.ne.s32.totalorder %s2149_s6, %s2150_s15  ;;  %p2156_p0 = scmp.lt.s32.totalorder %s2149_s6, %s2768_s1 }
  0x29   : > { %p2157_p3 = scmp.lt.s32.totalorder %s2155_s27, %s2150_s15 }
  0x2a   : > { %p2153_p12 = pnand %p2152_p11, %p2151_p2 }
  0x2b   : > { %p2158_p5 = por %p2157_p3, %p2156_p0 }
  0x2c   : > { %p2154_p13 = pneg %p2153_p12 }
  0x2e   : > { %p2159_p9 = pnand %p2158_p5, %p2154_p13 }
  0x30   : > { %2162 = shalt.err (!%p2159_p9)
}
  0x31   : > { %s2259_s16 = smov 16   ;;  %s2260_s17 = smov 1  }
  0x32   : > { %1899 = dma.hbm_to_vmem [thread:$0]  (!%p2424_p10), %s394_s14, 32, %s396_s12, %s385_s4, %s2259_s16, %s2259_s16, %s2260_s17  }
  0x33   : > { %407 = sbr.rel (%p2373_p8) target bundleno = 5418 (0x152a), region = 60  ;;  %s2441_s23 = sand.u32 (!%p2373_p8), 1, %s2244_s20  }
  0x34   : > { %s1824_s6 = sshll.u32 (!%p2373_p8), %s2441_s23, 1  ;;  %s410_s15 = scalar_lea.sflag (!%p2373_p8), [#allocation4], %s2441_s23 }
  0x35   : > { %s2447_s26 = scalar_lea.vmem (!%p2373_p8), [#allocation3], %s1824_s6 }
  0x38   : > { %2223 = dma.done.wait (%p2360_p4), %s410_s15, 32  }
  0x39   : > { %2225 = vsyncadd (%p2360_p4), %s410_s15, 4294967264 }
  0x3a   : > { %2227 = dma.done.wait (%p79_p1), [#allocation7], 384  }
  0x3b   : > { %2229 = vsyncadd (%p79_p1), [#allocation7], 4294966912 }
  0x3c   : > { %2231 = dma.done.wait (%p79_p1), [#allocation10], 512  }
  0x3d   : > { %2233 = vsyncadd (%p79_p1), [#allocation10], 4294966784  ;;  %p475_p8 = scmp.lt.s32.totalorder %s2351_s9, 1  ;;  %vm496_vm0 = vcmask 64512   ;;  %v2469_v1 = vld [vmem:[#allocation8 + $0x8] sm:$0xff]  ;;  %v491_v2 = vld [vmem:[#allocation6] sm:$0xff] }
  0x3e   : > { %v2471_v3 = vld [vmem:[#allocation8] sm:$0xff]  ;;  %541 = vmatpush.msra.mxu1 %v2469_v1  ;;  %515 = vmatpush.msra.mxu0 %v491_v2  ;;  %v520_v5 = vld [vmem:[%s2447_s26] sm:$0x1]  ;;  %vm523_vm1 = vcmask 130048   ;;  %v2486_v6 = vld [vmem:[%s2772_s5] sm:$0x1] }
  0x3f   : > { %s2463_s4 = scalar_select %p475_p8, %s2351_s9, 1  ;;  %678 = vmatpush.msra.mxu3 %v2469_v1  ;;  %v1958_v9 = vld [vmem:[%s2770_s3] ss:$0 sm:$0xff]  ;;  %v1957_v31 = vld [vmem:[%s2447_s26] ss:$0 sm:$0xff]  ;;  %v2508_v59 = vld [vmem:[#allocation9 + $0x18] sm:$0xff] }
  0x40   : > { %542 = vmatpush.msra.mxu1 %v2471_v3  ;;  %s2261_s30 = smov 96   ;;  %s2262_s17 = smov 32   ;;  %v1959_v44 = vld [vmem:[%s2447_s26 + $0x1] ss:$0 sm:$0xff]  ;;  %616 = vmatpush.msra.mxu2 %v2508_v59  ;;  %v2512_v60 = vld [vmem:[#allocation9 + $0x10] sm:$0xff]  ;;  %v2514_v61 = vld [vmem:[#allocation9 + $0x8] sm:$0xff] }
  0x41   : > { %s1829_s24 = sshll.u32 %s2463_s4, 3  ;;  %1832 = vmatmul.msk.f32.vlgmr.msra.gmra.mxu1 %vm523_vm1, %v520_v5  ;;  %679 = vmatpush.msra.mxu3 %v2471_v3  ;;  %s2263_s15 = smov 112   ;;  %v2523_v62 = vld [vmem:[#allocation9] sm:$0xff]  ;;  %vm600_vm10 = vcmask 261120  }
  0x42   : > { %s478_s12 = scalar_lea.vmem %s2767_s0, %s1829_s24  ;;  %816 = vmatpush.msrb.mxu1 %v2469_v1  ;;  %s2264_s24 = smov 16   ;;  %751 = vmatpush.msrb.mxu0 %v2508_v59 }
  0x43   : > { %v490_v4 = vld [vmem:[%s478_s12] sm:$0xff]  ;;  %889 = vmatpush.msrb.mxu3 %v2508_v59  ;;  %617 = vmatpush.msra.mxu2 %v2512_v60  ;;  %s2265_s14 = smov 80   ;;  %s2708_s27 = scalar_lea.vmem [#allocation11], %s1824_s6 }
  0x44   : > { %1830 = vmatmul.msk.f32.vlgmr.msra.gmra.mxu0 %vm496_vm0, %v490_v4  ;;  %817 = vmatpush.msrb.mxu1 %v2471_v3  ;;  %s1665_s6 = scalar_lea.sflag [#allocation5], %s2441_s23  ;;  %s2198_s29 = scalar_lea.hbm %s2778_s11, 4 }
  0x45   : > { %752 = vmatpush.msrb.mxu0 %v2512_v60  ;;  %890 = vmatpush.msrb.mxu3 %v2512_v60 }
  0x46   : > { %1092 = vmatpush.msra.mxu1 %v2469_v1  ;;  %618 = vmatpush.msra.mxu2 %v2514_v61 }
  0x47   : > { %753 = vmatpush.msrb.mxu0 %v2514_v61  ;;  %891 = vmatpush.msrb.mxu3 %v2514_v61 }
  0x48   : > { %1093 = vmatpush.msra.mxu1 %v2471_v3  ;;  %619 = vmatpush.msra.mxu2 %v2523_v62 }
  0x49   : > { %754 = vmatpush.msrb.mxu0 %v2523_v62  ;;  %892 = vmatpush.msrb.mxu3 %v2523_v62 }
  0x4a   : > { %954 = vmatpush.msrb.mxu2 %v2469_v1 }
  0x4b   : > { %1027 = vmatpush.msra.mxu0 %v2508_v59 }
  0x4c   : > { %955 = vmatpush.msrb.mxu2 %v2471_v3 }
  0x4d   : > { %1028 = vmatpush.msra.mxu0 %v2512_v60 }
  0x4f   : > { %1029 = vmatpush.msra.mxu0 %v2514_v61 }
  0x51   : > { %1030 = vmatpush.msra.mxu0 %v2523_v62 }
  0xbe   : > { %v544_v7 = vpop.f32.mrf.mxu1 }
  0xbf   : > { %v545_v8 = vadd.f32 %v544_v7, %v2486_v6 }
  0xc1   : > { %568 = vrot.lane.b32.xlu0 %v545_v8, %s2261_s30  ;;  %v517_v10 = vpop.f32.mrf.mxu0 }
  0xc2   : > { %v2493_v11 = vadd.f32 %v1958_v9, %v517_v10  ;;  %v2551_v9 = vld [vmem:[%s2774_s7] sm:$0x1] }
  0xc4   : > { %v547_v12 = vadd.f32 %v545_v8, %v2493_v11 }
  0xc6   : > { %v1833_v13 = vmul.f32 -1.442695, %v547_v12 }
  0xc8   : > { %1960 = vpow2.f32 %v1833_v13 }
  0xce   : > { %v1961_v14 = vpop.eup %1960 }
  0xcf   : > { %v551_v15 = vadd.f32 1.0, %v1961_v14 }
  0xd1   : > { %1962 = vrcp.f32 %v551_v15  ;;  %v563_v21 = vand.u32 2147483648, %v551_v15  ;;  %vm557_vm3 = vweird.f32 %v551_v15  ;;  %v561_v22 = vand.u32 2147483647, %v551_v15 }
  0xd3   : > { %v564_v24 = vor.u32 1.1754944e-38, %v563_v21  ;;  %vm562_vm5 = vcmp.eq.f32.partialorder %v561_v22, 8.507059e+37 }
  0xd7   : > { %v1963_v16 = vpop.eup %1962 }
  0xd8   : > { %v553_v17 = vmul.f32 %v1963_v16, %v551_v15  ;;  %vm558_vm2 = vweird.f32 %v1963_v16 }
  0xd9   : > { %vm559_vm4 = vmor %vm557_vm3, %vm558_vm2 }
  0xda   : > { %v554_v18 = vsub.f32 1.0, %v553_v17 }
  0xdc   : > { %v555_v19 = vmul.f32 %v1963_v16, %v554_v18 }
  0xde   : > { %v556_v20 = vadd.f32 %v1963_v16, %v555_v19 }
  0xe0   : > { %v560_v23 = vsel %vm559_vm4, %v1963_v16, %v556_v20 }
  0xe1   : > { %v565_v26 = vsel %vm562_vm5, %v564_v24, %v560_v23 }
  0xe2   : > { %v578_v33 = vsub.f32 1.0, %v565_v26 }
 0x133   : > { %v569_v25 = vpop.permute.xlu0 %568 }
 0x134   : > { %v571_v27 = vmul.f32 %v569_v25, %v565_v26 }
 0x136   : > { %573 = vrot.lane.b32.xlu0 %v571_v27, %s2262_s17 }
 0x1a8   : > { %v574_v28 = vpop.permute.xlu0 %573 }
 0x1a9   : > { %v576_v29 = vadd.f32 %v574_v28, %v2493_v11 }
 0x1ab   : > { %1964 = vtanh.f32 %v576_v29 }
 0x1b1   : > { %v1965_v30 = vpop.eup %1964 }
 0x1b2   : > { %580 = vrot.lane.b32.xlu1 %v1965_v30, %s2263_s15 }
 0x1ba   : > { %585 = vrot.lane.b32.xlu1 %v1957_v31, %s2264_s24 }
 0x224   : > { %v581_v32 = vpop.permute.xlu1 %580 }
 0x225   : > { %v583_v35 = vmul.f32 %v581_v32, %v578_v33 }
 0x22c   : > { %v586_v34 = vpop.permute.xlu1 %585 }
 0x22d   : > { %v588_v36 = vmul.f32 %v586_v34, %v565_v26 }
 0x22f   : > { %v589_v37 = vadd.f32 %v588_v36, %v583_v35 }
 0x231   : > { %591 = vrot.lane.b32.xlu2 %v589_v37, %s2263_s15  ;;  %v723_v55 = vrot.slane %v589_v37, 7 }
 0x28b   : > { %v592_v38 = vpop.permute.xlu2 %591 }
 0x28c   : > { %1836 = vmatmul.msk.f32.vlgmr.msra.gmra.mxu3 %vm523_vm1, %v592_v38 }
 0x28d   : > { %1165 = vmatpush.msra.mxu3 %v2508_v59 }
 0x28f   : > { %1166 = vmatpush.msra.mxu3 %v2512_v60 }
 0x291   : > { %1167 = vmatpush.msra.mxu3 %v2514_v61 }
 0x293   : > { %1168 = vmatpush.msra.mxu3 %v2523_v62 }
 0x30f   : > { %v681_v39 = vpop.f32.mrf.mxu3 }
 0x310   : > { %v682_v40 = vadd.f32 %v681_v39, %v2486_v6 }
 0x312   : > { %v685_v41 = vrot.slane %v682_v40, 7 }
 0x314   : > { %v687_v42 = vadd.f32 %v685_v41, %v2493_v11  ;;  %707 = vrot.lane.b32.xlu2 %v685_v41, %s2261_s30 }
 0x316   : > { %v1837_v43 = vmul.f32 -1.442695, %v687_v42 }
 0x318   : > { %1966 = vpow2.f32 %v1837_v43 }
 0x31c   : > { %596 = vrot.lane.b32.xlu2 %v1959_v44, %s2264_s24 }
 0x31e   : > { %v1967_v45 = vpop.eup %1966 }
 0x31f   : > { %v691_v46 = vadd.f32 1.0, %v1967_v45 }
 0x321   : > { %1968 = vrcp.f32 %v691_v46  ;;  %v703_v50 = vand.u32 2147483648, %v691_v46  ;;  %v701_v52 = vand.u32 2147483647, %v691_v46  ;;  %vm697_vm7 = vweird.f32 %v691_v46 }
 0x323   : > { %v704_v54 = vor.u32 1.1754944e-38, %v703_v50  ;;  %vm702_vm9 = vcmp.eq.f32.partialorder %v701_v52, 8.507059e+37 }
 0x327   : > { %v1969_v47 = vpop.eup %1968 }
 0x328   : > { %v693_v48 = vmul.f32 %v1969_v47, %v691_v46  ;;  %vm698_vm6 = vweird.f32 %v1969_v47 }
 0x329   : > { %vm699_vm8 = vmor %vm697_vm7, %vm698_vm6 }
 0x32a   : > { %v694_v49 = vsub.f32 1.0, %v693_v48 }
 0x32c   : > { %v695_v51 = vmul.f32 %v1969_v47, %v694_v49 }
 0x32e   : > { %v696_v53 = vadd.f32 %v1969_v47, %v695_v51 }
 0x330   : > { %v700_v56 = vsel %vm699_vm8, %v1969_v47, %v696_v53 }
 0x331   : > { %v705_v57 = vsel %vm702_vm9, %v704_v54, %v700_v56 }
 0x332   : > { %v725_v58 = vmul.f32 %v723_v55, %v705_v57  ;;  %v717_v18 = vsub.f32 1.0, %v705_v57 }
 0x36e   : > { %v708_v63 = vpop.permute.xlu2 %707 }
 0x36f   : > { %v710_v0 = vmul.f32 %v708_v63, %v705_v57 }
 0x371   : > { %712 = vrot.lane.b32.xlu0 %v710_v0, %s2262_s17 }
 0x376   : > { %v2539_v2 = vpop.permute.xlu2 %596 }
 0x377   : > { %v599_v4 = vsel %vm523_vm1, %v592_v38, %v2539_v2 }
 0x378   : > { %1834 = vmatmul.msk.f32.vlgmr.msra.gmra.mxu2 %vm600_vm10, %v599_v4 }
 0x379   : > { %1230 = vmatpush.msra.mxu2 %v2469_v1 }
 0x37b   : > { %1231 = vmatpush.msra.mxu2 %v2471_v3 }
 0x3e3   : > { %v713_v5 = vpop.permute.xlu0 %712 }
 0x3e4   : > { %v715_v7 = vadd.f32 %v713_v5, %v2493_v11 }
 0x3e6   : > { %1970 = vtanh.f32 %v715_v7 }
 0x3ec   : > { %v1971_v8 = vpop.eup %1970 }
 0x3ed   : > { %719 = vrot.lane.b32.xlu1 %v1971_v8, %s2263_s15 }
 0x3fb   : > { %v621_v10 = vpop.f32.mrf.mxu2 }
 0x3fc   : > { %v622_v12 = vadd.f32 %v621_v10, %v2551_v9 }
 0x3fe   : > { %644 = vrot.lane.b32.xlu1 %v622_v12, %s2265_s14  ;;  %v1835_v13 = vmul.f32 -1.442695, %v622_v12 }
 0x400   : > { %1972 = vpow2.f32 %v1835_v13 }
 0x406   : > { %v1973_v14 = vpop.eup %1972 }
 0x407   : > { %v627_v15 = vadd.f32 1.0, %v1973_v14 }
 0x409   : > { %1974 = vrcp.f32 %v627_v15  ;;  %v639_v26 = vand.u32 2147483648, %v627_v15  ;;  %vm633_vm12 = vweird.f32 %v627_v15  ;;  %v637_v27 = vand.u32 2147483647, %v627_v15 }
 0x40b   : > { %v640_v29 = vor.u32 1.1754944e-38, %v639_v26  ;;  %vm638_vm14 = vcmp.eq.f32.partialorder %v637_v27, 8.507059e+37 }
 0x40f   : > { %v1975_v16 = vpop.eup %1974 }
 0x410   : > { %v629_v17 = vmul.f32 %v1975_v16, %v627_v15  ;;  %vm634_vm11 = vweird.f32 %v1975_v16 }
 0x411   : > { %vm635_vm13 = vmor %vm633_vm12, %vm634_vm11 }
 0x412   : > { %v630_v21 = vsub.f32 1.0, %v629_v17 }
 0x414   : > { %v631_v24 = vmul.f32 %v1975_v16, %v630_v21 }
 0x416   : > { %v632_v25 = vadd.f32 %v1975_v16, %v631_v24 }
 0x418   : > { %v636_v28 = vsel %vm635_vm13, %v1975_v16, %v632_v25 }
 0x419   : > { %v641_v30 = vsel %vm638_vm14, %v640_v29, %v636_v28 }
 0x41a   : > { %v660_v0 = vmul.f32 %v641_v30, %v2539_v2 }
 0x45f   : > { %v720_v19 = vpop.permute.xlu1 %719 }
 0x460   : > { %v722_v20 = vmul.f32 %v720_v19, %v717_v18 }
 0x462   : > { %v726_v22 = vadd.f32 %v725_v58, %v722_v20  ;;  %v654_v58 = vsub.f32 1.0, %v641_v30 }
 0x464   : > { %v797_v23 = vrot.slane %v726_v22, 1  ;;  %v861_v53 = vrot.slane %v726_v22, 7 }
 0x466   : > { %798 = vrot.lane.b32.xlu0 %v797_v23, %s2263_s15 }
 0x470   : > { %v645_v31 = vpop.permute.xlu1 %644 }
 0x471   : > { %v647_v32 = vmul.f32 %v645_v31, %v641_v30 }
 0x473   : > { %649 = vrot.lane.b32.xlu0 %v647_v32, %s2262_s17 }
 0x47b   : > { %728 = vrot.lane.b32.xlu0 %v726_v22, %s2263_s15 }
 0x4d8   : > { %v799_v33 = vpop.permute.xlu0 %798 }
 0x4d9   : > { %1840 = vmatmul.msk.f32.vlgmr.msrb.gmra.mxu1 %vm523_vm1, %v799_v33 }
 0x4da   : > { %1368 = vmatpush.msrb.mxu1 %v2469_v1 }
 0x4dc   : > { %1369 = vmatpush.msrb.mxu1 %v2471_v3 }
 0x4e5   : > { %v650_v34 = vpop.permute.xlu0 %649 }
 0x4e6   : > { %v652_v37 = vadd.f32 %v650_v34, %v622_v12 }
 0x4e8   : > { %1976 = vtanh.f32 %v652_v37 }
 0x4ed   : > { %v729_v8 = vpop.permute.xlu0 %728 }
 0x4ee   : > { %v1977_v41 = vpop.eup %1976 }
 0x556   : > { %v819_v35 = vpop.f32.mrf.mxu1 }
 0x557   : > { %v820_v36 = vadd.f32 %v819_v35, %v2486_v6 }
 0x559   : > { %v823_v38 = vrot.slane %v820_v36, 6 }
 0x55b   : > { %v825_v39 = vadd.f32 %v823_v38, %v2493_v11  ;;  %845 = vrot.lane.b32.xlu2 %v823_v38, %s2261_s30 }
 0x55d   : > { %v1841_v40 = vmul.f32 -1.442695, %v825_v39 }
 0x55f   : > { %1978 = vpow2.f32 %v1841_v40 }
 0x563   : > { %656 = vrot.lane.b32.xlu2 %v1977_v41, %s2263_s15 }
 0x565   : > { %v1979_v42 = vpop.eup %1978 }
 0x566   : > { %v829_v43 = vadd.f32 1.0, %v1979_v42 }
 0x568   : > { %1980 = vrcp.f32 %v829_v43  ;;  %v841_v47 = vand.u32 2147483648, %v829_v43  ;;  %v839_v49 = vand.u32 2147483647, %v829_v43  ;;  %vm835_vm0 = vweird.f32 %v829_v43 }
 0x56a   : > { %v842_v51 = vor.u32 1.1754944e-38, %v841_v47  ;;  %vm840_vm3 = vcmp.eq.f32.partialorder %v839_v49, 8.507059e+37 }
 0x56e   : > { %v1981_v44 = vpop.eup %1980 }
 0x56f   : > { %v831_v45 = vmul.f32 %v1981_v44, %v829_v43  ;;  %vm836_vm15 = vweird.f32 %v1981_v44 }
 0x570   : > { %vm837_vm2 = vmor %vm835_vm0, %vm836_vm15 }
 0x571   : > { %v832_v46 = vsub.f32 1.0, %v831_v45 }
 0x573   : > { %v833_v48 = vmul.f32 %v1981_v44, %v832_v46 }
 0x575   : > { %v834_v50 = vadd.f32 %v1981_v44, %v833_v48 }
 0x577   : > { %v838_v52 = vsel %vm837_vm2, %v1981_v44, %v834_v50 }
 0x578   : > { %v843_v54 = vsel %vm840_vm3, %v842_v51, %v838_v52 }
 0x579   : > { %v863_v55 = vmul.f32 %v861_v53, %v843_v54  ;;  %v855_v21 = vsub.f32 1.0, %v843_v54 }
 0x5b5   : > { %v846_v56 = vpop.permute.xlu2 %845 }
 0x5b6   : > { %v848_v57 = vmul.f32 %v846_v56, %v843_v54 }
 0x5b8   : > { %850 = vrot.lane.b32.xlu1 %v848_v57, %s2262_s17 }
 0x5bd   : > { %v657_v63 = vpop.permute.xlu2 %656 }
 0x5be   : > { %v659_v4 = vmul.f32 %v657_v63, %v654_v58 }
 0x5c0   : > { %v2567_v5 = vadd.f32 %v660_v0, %v659_v4 }
 0x5c2   : > { %v732_v7 = vrot.slane %v2567_v5, 7 }
 0x5c4   : > { %v734_v10 = vsel %vm523_vm1, %v729_v8, %v732_v7 }
 0x5c5   : > { %v736_v12 = vrot.slane %v734_v10, 1 }
 0x5c7   : > { %1838 = vmatmul.msk.f32.vlgmr.msrb.gmra.mxu0 %vm600_vm10, %v736_v12 }
 0x5c8   : > { %1303 = vmatpush.msrb.mxu0 %v2508_v59 }
 0x5ca   : > { %1304 = vmatpush.msrb.mxu0 %v2512_v60 }
 0x5cc   : > { %1305 = vmatpush.msrb.mxu0 %v2514_v61 }
 0x5ce   : > { %1306 = vmatpush.msrb.mxu0 %v2523_v62 }
 0x62a   : > { %v851_v2 = vpop.permute.xlu1 %850 }
 0x62b   : > { %v853_v13 = vadd.f32 %v851_v2, %v2493_v11 }
 0x62d   : > { %1982 = vtanh.f32 %v853_v13 }
 0x633   : > { %v1983_v14 = vpop.eup %1982 }
 0x634   : > { %857 = vrot.lane.b32.xlu1 %v1983_v14, %s2263_s15 }
 0x644   : > { %v756_v15 = vpop.f32.mrf.mxu0 }
 0x645   : > { %v757_v16 = vadd.f32 %v756_v15, %v2551_v9 }
 0x647   : > { %779 = vrot.lane.b32.xlu0 %v757_v16, %s2265_s14  ;;  %v1839_v17 = vmul.f32 -1.442695, %v757_v16 }
 0x649   : > { %1984 = vpow2.f32 %v1839_v17 }
 0x64f   : > { %v1985_v18 = vpop.eup %1984 }
 0x650   : > { %v762_v19 = vadd.f32 1.0, %v1985_v18 }
 0x652   : > { %1986 = vrcp.f32 %v762_v19  ;;  %v774_v30 = vand.u32 2147483648, %v762_v19  ;;  %vm768_vm5 = vweird.f32 %v762_v19  ;;  %v772_v31 = vand.u32 2147483647, %v762_v19 }
 0x654   : > { %v775_v33 = vor.u32 1.1754944e-38, %v774_v30  ;;  %vm773_vm7 = vcmp.eq.f32.partialorder %v772_v31, 8.507059e+37 }
 0x658   : > { %v1987_v20 = vpop.eup %1986 }
 0x659   : > { %v764_v23 = vmul.f32 %v1987_v20, %v762_v19  ;;  %vm769_vm4 = vweird.f32 %v1987_v20 }
 0x65a   : > { %vm770_vm6 = vmor %vm768_vm5, %vm769_vm4 }
 0x65b   : > { %v765_v26 = vsub.f32 1.0, %v764_v23 }
 0x65d   : > { %v766_v28 = vmul.f32 %v1987_v20, %v765_v26 }
 0x65f   : > { %v767_v29 = vadd.f32 %v1987_v20, %v766_v28 }
 0x661   : > { %v771_v32 = vsel %vm770_vm6, %v1987_v20, %v767_v29 }
 0x662   : > { %v776_v35 = vsel %vm773_vm7, %v775_v33, %v771_v32 }
 0x663   : > { %v789_v52 = vsub.f32 1.0, %v776_v35 }
 0x6a6   : > { %v858_v22 = vpop.permute.xlu1 %857 }
 0x6a7   : > { %v860_v24 = vmul.f32 %v858_v22, %v855_v21 }
 0x6a9   : > { %v864_v25 = vadd.f32 %v863_v55, %v860_v24  ;;  %v795_v55 = vmul.f32 %v776_v35, %v2567_v5 }
 0x6ab   : > { %v935_v27 = vrot.slane %v864_v25, 2  ;;  %v999_v63 = vrot.slane %v864_v25, 7 }
 0x6ad   : > { %936 = vrot.lane.b32.xlu2 %v935_v27, %s2263_s15 }
 0x6b9   : > { %v780_v34 = vpop.permute.xlu0 %779 }
 0x6ba   : > { %v782_v36 = vmul.f32 %v780_v34, %v776_v35 }
 0x6bc   : > { %784 = vrot.lane.b32.xlu1 %v782_v36, %s2262_s17 }
 0x6c4   : > { %866 = vrot.lane.b32.xlu1 %v864_v25, %s2263_s15 }
 0x707   : > { %v937_v37 = vpop.permute.xlu2 %936 }
 0x708   : > { %1844 = vmatmul.msk.f32.vlgmr.msrb.gmra.mxu2 %vm523_vm1, %v937_v37 }
 0x709   : > { %1506 = vmatpush.msrb.mxu2 %v2469_v1 }
 0x70b   : > { %1507 = vmatpush.msrb.mxu2 %v2471_v3 }
 0x72e   : > { %v785_v38 = vpop.permute.xlu1 %784 }
 0x72f   : > { %v787_v39 = vadd.f32 %v785_v38, %v757_v16 }
 0x731   : > { %1988 = vtanh.f32 %v787_v39 }
 0x736   : > { %v867_v10 = vpop.permute.xlu1 %866 }
 0x737   : > { %v1989_v40 = vpop.eup %1988 }
 0x738   : > { %791 = vrot.lane.b32.xlu0 %v1989_v40, %s2263_s15 }
 0x78b   : > { %v957_v41 = vpop.f32.mrf.mxu2 }
 0x78c   : > { %v958_v42 = vadd.f32 %v957_v41, %v2486_v6 }
 0x78e   : > { %v961_v43 = vrot.slane %v958_v42, 5 }
 0x790   : > { %v963_v44 = vadd.f32 %v961_v43, %v2493_v11  ;;  %983 = vrot.lane.b32.xlu2 %v961_v43, %s2261_s30 }
 0x792   : > { %v1845_v45 = vmul.f32 -1.442695, %v963_v44 }
 0x794   : > { %1990 = vpow2.f32 %v1845_v45 }
 0x79a   : > { %v1991_v46 = vpop.eup %1990 }
 0x79b   : > { %v967_v1 = vadd.f32 1.0, %v1991_v46 }
 0x79d   : > { %1992 = vrcp.f32 %v967_v1  ;;  %v979_v49 = vand.u32 2147483648, %v967_v1  ;;  %v977_v51 = vand.u32 2147483647, %v967_v1  ;;  %vm973_vm9 = vweird.f32 %v967_v1 }
 0x79f   : > { %v980_v57 = vor.u32 1.1754944e-38, %v979_v49  ;;  %vm978_vm12 = vcmp.eq.f32.partialorder %v977_v51, 8.507059e+37 }
 0x7a3   : > { %v1993_v3 = vpop.eup %1992 }
 0x7a4   : > { %v969_v47 = vmul.f32 %v1993_v3, %v967_v1  ;;  %vm974_vm8 = vweird.f32 %v1993_v3 }
 0x7a5   : > { %vm975_vm11 = vmor %vm973_vm9, %vm974_vm8 }
 0x7a6   : > { %v970_v48 = vsub.f32 1.0, %v969_v47 }
 0x7a8   : > { %v971_v50 = vmul.f32 %v1993_v3, %v970_v48 }
 0x7aa   : > { %v792_v53 = vpop.permute.xlu0 %791  ;;  %v972_v54 = vadd.f32 %v1993_v3, %v971_v50 }
 0x7ab   : > { %v794_v56 = vmul.f32 %v792_v53, %v789_v52 }
 0x7ac   : > { %v976_v58 = vsel %vm975_vm11, %v1993_v3, %v972_v54 }
 0x7ad   : > { %v796_v0 = vadd.f32 %v795_v55, %v794_v56  ;;  %v981_v4 = vsel %vm978_vm12, %v980_v57, %v976_v58 }
 0x7ae   : > { %v1001_v7 = vmul.f32 %v999_v63, %v981_v4  ;;  %v993_v34 = vsub.f32 1.0, %v981_v4 }
 0x7af   : > { %v870_v8 = vrot.slane %v796_v0, 6 }
 0x7b1   : > { %v872_v12 = vsel %vm523_vm1, %v867_v10, %v870_v8 }
 0x7b2   : > { %v874_v2 = vrot.slane %v872_v12, 2 }
 0x7b4   : > { %1842 = vmatmul.msk.f32.vlgmr.msrb.gmra.mxu3 %vm600_vm10, %v874_v2 }
 0x7b5   : > { %1441 = vmatpush.msrb.mxu3 %v2508_v59 }
 0x7b7   : > { %1442 = vmatpush.msrb.mxu3 %v2512_v60 }
 0x7b9   : > { %1443 = vmatpush.msrb.mxu3 %v2514_v61 }
 0x7bb   : > { %1444 = vmatpush.msrb.mxu3 %v2523_v62 }
 0x7ea   : > { %v984_v5 = vpop.permute.xlu2 %983 }
 0x7eb   : > { %v986_v13 = vmul.f32 %v984_v5, %v981_v4 }
 0x7ed   : > { %988 = vrot.lane.b32.xlu2 %v986_v13, %s2262_s17 }
 0x837   : > { %v894_v14 = vpop.f32.mrf.mxu3 }
 0x838   : > { %v895_v15 = vadd.f32 %v894_v14, %v2551_v9 }
 0x83a   : > { %917 = vrot.lane.b32.xlu2 %v895_v15, %s2265_s14  ;;  %v1843_v19 = vmul.f32 -1.442695, %v895_v15 }
 0x847   : > { %v989_v16 = vpop.permute.xlu2 %988 }
 0x848   : > { %v991_v17 = vadd.f32 %v989_v16, %v2493_v11 }
 0x84a   : > { %1994 = vtanh.f32 %v991_v17 }
 0x84b   : > { %1996 = vpow2.f32 %v1843_v19 }
 0x850   : > { %v1995_v18 = vpop.eup %1994 }
 0x851   : > { %995 = vrot.lane.b32.xlu0 %v1995_v18, %s2263_s15  ;;  %v1997_v20 = vpop.eup %1996 }
 0x852   : > { %v900_v21 = vadd.f32 1.0, %v1997_v20 }
 0x854   : > { %1998 = vrcp.f32 %v900_v21  ;;  %v912_v27 = vand.u32 2147483648, %v900_v21  ;;  %vm906_vm14 = vweird.f32 %v900_v21  ;;  %v910_v28 = vand.u32 2147483647, %v900_v21 }
 0x856   : > { %v913_v30 = vor.u32 1.1754944e-38, %v912_v27  ;;  %vm911_vm0 = vcmp.eq.f32.partialorder %v910_v28, 8.507059e+37 }
 0x85a   : > { %v1999_v22 = vpop.eup %1998 }
 0x85b   : > { %v902_v23 = vmul.f32 %v1999_v22, %v900_v21  ;;  %vm907_vm13 = vweird.f32 %v1999_v22 }
 0x85c   : > { %vm908_vm15 = vmor %vm906_vm14, %vm907_vm13 }
 0x85d   : > { %v903_v24 = vsub.f32 1.0, %v902_v23 }
 0x85f   : > { %v904_v25 = vmul.f32 %v1999_v22, %v903_v24 }
 0x861   : > { %v905_v26 = vadd.f32 %v1999_v22, %v904_v25 }
 0x863   : > { %v909_v29 = vsel %vm908_vm15, %v1999_v22, %v905_v26 }
 0x864   : > { %v914_v32 = vsel %vm911_vm0, %v913_v30, %v909_v29 }
 0x865   : > { %v927_v43 = vsub.f32 1.0, %v914_v32  ;;  %v933_v45 = vmul.f32 %v914_v32, %v796_v0 }
 0x894   : > { %v918_v31 = vpop.permute.xlu2 %917 }
 0x895   : > { %v920_v33 = vmul.f32 %v918_v31, %v914_v32 }
 0x897   : > { %922 = vrot.lane.b32.xlu0 %v920_v33, %s2262_s17 }
 0x8c3   : > { %v996_v35 = vpop.permute.xlu0 %995 }
 0x8c4   : > { %v998_v36 = vmul.f32 %v996_v35, %v993_v34 }
 0x8c6   : > { %v2603_v37 = vadd.f32 %v1001_v7, %v998_v36 }
 0x8c8   : > { %1004 = vrot.lane.b32.xlu2 %v2603_v37, %s2263_s15  ;;  %v1073_v38 = vrot.slane %v2603_v37, 3  ;;  %v1137_v31 = vrot.slane %v2603_v37, 7 }
 0x8ca   : > { %1074 = vrot.lane.b32.xlu1 %v1073_v38, %s2263_s15 }
 0x909   : > { %v923_v39 = vpop.permute.xlu0 %922 }
 0x90a   : > { %v925_v40 = vadd.f32 %v923_v39, %v895_v15 }
 0x90c   : > { %2000 = vtanh.f32 %v925_v40 }
 0x912   : > { %v2001_v41 = vpop.eup %2000 }
 0x913   : > { %929 = vrot.lane.b32.xlu1 %v2001_v41, %s2263_s15 }
 0x922   : > { %v1005_v47 = vpop.permute.xlu2 %1004 }
 0x93c   : > { %v1075_v42 = vpop.permute.xlu1 %1074 }
 0x93d   : > { %1848 = vmatmul.msk.f32.vlgmr.msra.gmra.mxu1 %vm523_vm1, %v1075_v42 }
 0x985   : > { %v930_v44 = vpop.permute.xlu1 %929 }
 0x986   : > { %v932_v46 = vmul.f32 %v930_v44, %v927_v43 }
 0x988   : > { %v2611_v1 = vadd.f32 %v933_v45, %v932_v46 }
 0x98a   : > { %v1008_v3 = vrot.slane %v2611_v1, 5 }
 0x98c   : > { %v1010_v48 = vsel %vm523_vm1, %v1005_v47, %v1008_v3 }
 0x98d   : > { %v1012_v49 = vrot.slane %v1010_v48, 3 }
 0x98f   : > { %1846 = vmatmul.msk.f32.vlgmr.msra.gmra.mxu0 %vm600_vm10, %v1012_v49 }
 0x990   : > { %1579 = vmatpush.msra.mxu0 %v2508_v59 }
 0x992   : > { %1580 = vmatpush.msra.mxu0 %v2512_v60 }
 0x994   : > { %1581 = vmatpush.msra.mxu0 %v2514_v61 }
 0x996   : > { %1582 = vmatpush.msra.mxu0 %v2523_v62 }
 0x9ba   : > { %v1095_v50 = vpop.f32.mrf.mxu1 }
 0x9bb   : > { %v1096_v51 = vadd.f32 %v1095_v50, %v2486_v6 }
 0x9bd   : > { %v1099_v52 = vrot.slane %v1096_v51, 4 }
 0x9bf   : > { %1121 = vrot.lane.b32.xlu0 %v1099_v52, %s2261_s30  ;;  %v1101_v53 = vadd.f32 %v1099_v52, %v2493_v11 }
 0x9c1   : > { %v1849_v54 = vmul.f32 -1.442695, %v1101_v53 }
 0x9c3   : > { %2002 = vpow2.f32 %v1849_v54 }
 0x9c9   : > { %v2003_v55 = vpop.eup %2002 }
 0x9ca   : > { %v1105_v56 = vadd.f32 1.0, %v2003_v55 }
 0x9cc   : > { %2004 = vrcp.f32 %v1105_v56  ;;  %v1117_v62 = vand.u32 2147483648, %v1105_v56  ;;  %vm1111_vm3 = vweird.f32 %v1105_v56  ;;  %v1115_v63 = vand.u32 2147483647, %v1105_v56 }
 0x9ce   : > { %v1118_v4 = vor.u32 1.1754944e-38, %v1117_v62  ;;  %vm1116_vm5 = vcmp.eq.f32.partialorder %v1115_v63, 8.507059e+37 }
 0x9d2   : > { %v2005_v59 = vpop.eup %2004 }
 0x9d3   : > { %v1107_v57 = vmul.f32 %v2005_v59, %v1105_v56  ;;  %vm1112_vm2 = vweird.f32 %v2005_v59 }
 0x9d4   : > { %vm1113_vm4 = vmor %vm1111_vm3, %vm1112_vm2 }
 0x9d5   : > { %v1108_v60 = vsub.f32 1.0, %v1107_v57 }
 0x9d7   : > { %v1109_v58 = vmul.f32 %v2005_v59, %v1108_v60 }
 0x9d9   : > { %v1110_v61 = vadd.f32 %v2005_v59, %v1109_v58 }
 0x9db   : > { %v1114_v0 = vsel %vm1113_vm4, %v2005_v59, %v1110_v61 }
 0x9dc   : > { %v1119_v8 = vsel %vm1116_vm5, %v1118_v4, %v1114_v0 }
 0x9dd   : > { %v1131_v30 = vsub.f32 1.0, %v1119_v8  ;;  %v1139_v33 = vmul.f32 %v1137_v31, %v1119_v8 }
 0xa0c   : > { %v1032_v12 = vpop.f32.mrf.mxu0 }
 0xa0d   : > { %v1033_v2 = vadd.f32 %v1032_v12, %v2551_v9 }
 0xa0f   : > { %v1847_v5 = vmul.f32 -1.442695, %v1033_v2 }
 0xa11   : > { %2006 = vpow2.f32 %v1847_v5 }
 0xa17   : > { %v2007_v13 = vpop.eup %2006 }
 0xa18   : > { %v1038_v14 = vadd.f32 1.0, %v2007_v13 }
 0xa1a   : > { %2008 = vrcp.f32 %v1038_v14  ;;  %v1050_v23 = vand.u32 2147483648, %v1038_v14  ;;  %vm1044_vm7 = vweird.f32 %v1038_v14  ;;  %v1048_v24 = vand.u32 2147483647, %v1038_v14 }
 0xa1c   : > { %v1051_v26 = vor.u32 1.1754944e-38, %v1050_v23  ;;  %vm1049_vm9 = vcmp.eq.f32.partialorder %v1048_v24, 8.507059e+37 }
 0xa20   : > { %v2009_v15 = vpop.eup %2008 }
 0xa21   : > { %v1040_v16 = vmul.f32 %v2009_v15, %v1038_v14  ;;  %vm1045_vm6 = vweird.f32 %v2009_v15 }
 0xa22   : > { %vm1046_vm8 = vmor %vm1044_vm7, %vm1045_vm6 }
 0xa23   : > { %v1041_v18 = vsub.f32 1.0, %v1040_v16 }
 0xa25   : > { %v1042_v20 = vmul.f32 %v2009_v15, %v1041_v18 }
 0xa27   : > { %v1043_v21 = vadd.f32 %v2009_v15, %v1042_v20 }
 0xa29   : > { %v1047_v25 = vsel %vm1046_vm8, %v2009_v15, %v1043_v21 }
 0xa2a   : > { %v1052_v28 = vsel %vm1049_vm9, %v1051_v26, %v1047_v25 }
 0xa2b   : > { %v1065_v42 = vsub.f32 1.0, %v1052_v28  ;;  %v1071_v43 = vmul.f32 %v1052_v28, %v2611_v1 }
 0xa31   : > { %v1122_v7 = vpop.permute.xlu0 %1121 }
 0xa32   : > { %v1124_v10 = vmul.f32 %v1122_v7, %v1119_v8 }
 0xa34   : > { %1126 = vrot.lane.b32.xlu1 %v1124_v10, %s2262_s17 }
 0xa3c   : > { %1055 = vrot.lane.b32.xlu1 %v1033_v2, %s2265_s14 }
 0xaa6   : > { %v1127_v17 = vpop.permute.xlu1 %1126 }
 0xaa7   : > { %v1129_v19 = vadd.f32 %v1127_v17, %v2493_v11 }
 0xaa9   : > { %2010 = vtanh.f32 %v1129_v19 }
 0xaae   : > { %v1056_v27 = vpop.permute.xlu1 %1055 }
 0xaaf   : > { %v2011_v22 = vpop.eup %2010  ;;  %v1058_v29 = vmul.f32 %v1056_v27, %v1052_v28 }
 0xab0   : > { %1133 = vrot.lane.b32.xlu2 %v2011_v22, %s2263_s15 }
 0xab8   : > { %1060 = vrot.lane.b32.xlu2 %v1058_v29, %s2262_s17 }
 0xb0a   : > { %v1134_v32 = vpop.permute.xlu2 %1133 }
 0xb0b   : > { %v1136_v34 = vmul.f32 %v1134_v32, %v1131_v30 }
 0xb0d   : > { %v1140_v35 = vadd.f32 %v1139_v33, %v1136_v34 }
 0xb0f   : > { %1142 = vrot.lane.b32.xlu1 %v1140_v35, %s2263_s15  ;;  %v1211_v36 = vrot.slane %v1140_v35, 4  ;;  %v1275_v4 = vrot.slane %v1140_v35, 7 }
 0xb11   : > { %1212 = vrot.lane.b32.xlu0 %v1211_v36, %s2263_s15 }
 0xb12   : > { %v1061_v38 = vpop.permute.xlu2 %1060 }
 0xb13   : > { %v1063_v39 = vadd.f32 %v1061_v38, %v1033_v2 }
 0xb15   : > { %2012 = vtanh.f32 %v1063_v39 }
 0xb1b   : > { %v2013_v40 = vpop.eup %2012 }
 0xb1c   : > { %1067 = vrot.lane.b32.xlu0 %v2013_v40, %s2263_s15 }
 0xb81   : > { %v1143_v3 = vpop.permute.xlu1 %1142 }
 0xb83   : > { %v1213_v41 = vpop.permute.xlu0 %1212 }
 0xb84   : > { %1852 = vmatmul.msk.f32.vlgmr.msra.gmra.mxu2 %vm523_vm1, %v1213_v41 }
 0xb8e   : > { %v1068_v37 = vpop.permute.xlu0 %1067 }
 0xb8f   : > { %v1070_v44 = vmul.f32 %v1068_v37, %v1065_v42 }
 0xb91   : > { %v2635_v45 = vadd.f32 %v1071_v43, %v1070_v44 }
 0xb93   : > { %v1146_v46 = vrot.slane %v2635_v45, 4 }
 0xb95   : > { %v1148_v47 = vsel %vm523_vm1, %v1143_v3, %v1146_v46 }
 0xb96   : > { %v1150_v48 = vrot.slane %v1148_v47, 4 }
 0xb98   : > { %1850 = vmatmul.msk.f32.vlgmr.msra.gmra.mxu3 %vm600_vm10, %v1150_v48  ;;  %v2666_v48 = vld [vmem:[%s2772_s5] sm:$0x1] }
 0xc07   : > { %v1233_v49 = vpop.f32.mrf.mxu2 }
 0xc08   : > { %v1234_v50 = vadd.f32 %v1233_v49, %v2486_v6 }
 0xc0a   : > { %v1237_v51 = vrot.slane %v1234_v50, 3 }
 0xc0c   : > { %v1239_v52 = vadd.f32 %v1237_v51, %v2493_v11  ;;  %1259 = vrot.lane.b32.xlu2 %v1237_v51, %s2261_s30 }
 0xc0e   : > { %v1853_v1 = vmul.f32 -1.442695, %v1239_v52 }
 0xc10   : > { %2014 = vpow2.f32 %v1853_v1 }
 0xc16   : > { %v2015_v53 = vpop.eup %2014 }
 0xc17   : > { %v1243_v54 = vadd.f32 1.0, %v2015_v53 }
 0xc19   : > { %2016 = vrcp.f32 %v1243_v54  ;;  %v1255_v58 = vand.u32 2147483648, %v1243_v54  ;;  %v1253_v61 = vand.u32 2147483647, %v1243_v54  ;;  %vm1249_vm12 = vweird.f32 %v1243_v54 }
 0xc1b   : > { %v1170_v55 = vpop.f32.mrf.mxu3  ;;  %v1256_v63 = vor.u32 1.1754944e-38, %v1255_v58  ;;  %vm1254_vm14 = vcmp.eq.f32.partialorder %v1253_v61, 8.507059e+37 }
 0xc1c   : > { %v1171_v56 = vadd.f32 %v1170_v55, %v2551_v9 }
 0xc1e   : > { %1193 = vrot.lane.b32.xlu2 %v1171_v56, %s2265_s14  ;;  %v1851_v2 = vmul.f32 -1.442695, %v1171_v56 }
 0xc1f   : > { %v2017_v59 = vpop.eup %2016 }
 0xc20   : > { %v1245_v57 = vmul.f32 %v2017_v59, %v1243_v54  ;;  %vm1250_vm11 = vweird.f32 %v2017_v59  ;;  %2018 = vpow2.f32 %v1851_v2 }
 0xc21   : > { %vm1251_vm13 = vmor %vm1249_vm12, %vm1250_vm11 }
 0xc22   : > { %v1246_v60 = vsub.f32 1.0, %v1245_v57 }
 0xc24   : > { %v1247_v6 = vmul.f32 %v2017_v59, %v1246_v60 }
 0xc26   : > { %v1248_v62 = vadd.f32 %v2017_v59, %v1247_v6  ;;  %v2019_v5 = vpop.eup %2018 }
 0xc27   : > { %v1176_v13 = vadd.f32 1.0, %v2019_v5 }
 0xc28   : > { %v1252_v0 = vsel %vm1251_vm13, %v2017_v59, %v1248_v62 }
 0xc29   : > { %v1257_v7 = vsel %vm1254_vm14, %v1256_v63, %v1252_v0  ;;  %2020 = vrcp.f32 %v1176_v13  ;;  %v1188_v22 = vand.u32 2147483648, %v1176_v13  ;;  %vm1182_vm0 = vweird.f32 %v1176_v13 }
 0xc2a   : > { %v1277_v8 = vmul.f32 %v1275_v4, %v1257_v7  ;;  %v1186_v23 = vand.u32 2147483647, %v1176_v13  ;;  %v1269_v29 = vsub.f32 1.0, %v1257_v7 }
 0xc2b   : > { %v1189_v26 = vor.u32 1.1754944e-38, %v1188_v22 }
 0xc2c   : > { %vm1187_vm3 = vcmp.eq.f32.partialorder %v1186_v23, 8.507059e+37 }
 0xc2f   : > { %v2021_v14 = vpop.eup %2020 }
 0xc30   : > { %v1178_v15 = vmul.f32 %v2021_v14, %v1176_v13  ;;  %vm1183_vm15 = vweird.f32 %v2021_v14 }
 0xc31   : > { %vm1184_vm2 = vmor %vm1182_vm0, %vm1183_vm15 }
 0xc32   : > { %v1179_v16 = vsub.f32 1.0, %v1178_v15 }
 0xc34   : > { %v1180_v19 = vmul.f32 %v2021_v14, %v1179_v16 }
 0xc36   : > { %v1181_v20 = vadd.f32 %v2021_v14, %v1180_v19 }
 0xc38   : > { %v1185_v24 = vsel %vm1184_vm2, %v2021_v14, %v1181_v20 }
 0xc39   : > { %v1190_v27 = vsel %vm1187_vm3, %v1189_v26, %v1185_v24 }
 0xc3a   : > { %v1203_v39 = vsub.f32 1.0, %v1190_v27  ;;  %v1209_v42 = vmul.f32 %v1190_v27, %v2635_v45 }
 0xc66   : > { %v1260_v10 = vpop.permute.xlu2 %1259 }
 0xc67   : > { %v1262_v12 = vmul.f32 %v1260_v10, %v1257_v7 }
 0xc69   : > { %1264 = vrot.lane.b32.xlu0 %v1262_v12, %s2262_s17 }
 0xc78   : > { %v1194_v25 = vpop.permute.xlu2 %1193 }
 0xc79   : > { %v1196_v28 = vmul.f32 %v1194_v25, %v1190_v27 }
 0xcdb   : > { %v1265_v17 = vpop.permute.xlu0 %1264 }
 0xcdc   : > { %v1267_v18 = vadd.f32 %v1265_v17, %v2493_v11 }
 0xcde   : > { %2022 = vtanh.f32 %v1267_v18 }
 0xce4   : > { %v2023_v21 = vpop.eup %2022 }
 0xce5   : > { %1271 = vrot.lane.b32.xlu1 %v2023_v21, %s2263_s15 }
 0xced   : > { %1198 = vrot.lane.b32.xlu1 %v1196_v28, %s2262_s17 }
 0xd57   : > { %v1272_v30 = vpop.permute.xlu1 %1271 }
 0xd58   : > { %v1274_v31 = vmul.f32 %v1272_v30, %v1269_v29 }
 0xd5a   : > { %v2649_v32 = vadd.f32 %v1277_v8, %v1274_v31 }
 0xd5c   : > { %v1349_v33 = vrot.slane %v2649_v32, 5  ;;  %v1413_v29 = vrot.slane %v2649_v32, 7 }
 0xd5e   : > { %1350 = vrot.lane.b32.xlu0 %v1349_v33, %s2263_s15 }
 0xd5f   : > { %v1199_v34 = vpop.permute.xlu1 %1198 }
 0xd60   : > { %v1201_v35 = vadd.f32 %v1199_v34, %v1171_v56 }
 0xd62   : > { %2024 = vtanh.f32 %v1201_v35 }
 0xd66   : > { %1280 = vrot.lane.b32.xlu0 %v2649_v32, %s2263_s15 }
 0xd68   : > { %v2025_v36 = vpop.eup %2024 }
 0xd69   : > { %1205 = vrot.lane.b32.xlu2 %v2025_v36, %s2263_s15 }
 0xdc3   : > { %v1206_v38 = vpop.permute.xlu2 %1205 }
 0xdc4   : > { %v1208_v40 = vmul.f32 %v1206_v38, %v1203_v39 }
 0xdc6   : > { %v2658_v37 = vadd.f32 %v1209_v42, %v1208_v40 }
 0xdc8   : > { %v1284_v43 = vrot.slane %v2658_v37, 3 }
 0xdd0   : > { %v1351_v41 = vpop.permute.xlu0 %1350 }
 0xdd1   : > { %1856 = vmatmul.msk.f32.vlgmr.msrb.gmra.mxu1 %vm523_vm1, %v1351_v41 }
 0xdd8   : > { %v1281_v44 = vpop.permute.xlu0 %1280 }
 0xdd9   : > { %v1286_v46 = vsel %vm523_vm1, %v1281_v44, %v1284_v43 }
 0xdda   : > { %v1288_v3 = vrot.slane %v1286_v46, 5 }
 0xddc   : > { %1854 = vmatmul.msk.f32.vlgmr.msrb.gmra.mxu0 %vm600_vm10, %v1288_v3 }
 0xe4e   : > { %v1371_v47 = vpop.f32.mrf.mxu1 }
 0xe4f   : > { %v1372_v45 = vadd.f32 %v2666_v48, %v1371_v47 }
 0xe51   : > { %v1375_v49 = vrot.slane %v1372_v45, 2 }
 0xe53   : > { %1397 = vrot.lane.b32.xlu1 %v1375_v49, %s2261_s30  ;;  %v1377_v52 = vadd.f32 %v1375_v49, %v2493_v11 }
 0xe55   : > { %v1857_v1 = vmul.f32 -1.442695, %v1377_v52 }
 0xe57   : > { %2026 = vpow2.f32 %v1857_v1 }
 0xe59   : > { %v1308_v50 = vpop.f32.mrf.mxu0 }
 0xe5a   : > { %v1309_v51 = vadd.f32 %v1308_v50, %v2551_v9 }
 0xe5c   : > { %1331 = vrot.lane.b32.xlu0 %v1309_v51, %s2265_s14  ;;  %v1855_v53 = vmul.f32 -1.442695, %v1309_v51 }
 0xe5d   : > { %v2027_v54 = vpop.eup %2026 }
 0xe5e   : > { %v1381_v55 = vadd.f32 1.0, %v2027_v54  ;;  %2028 = vpow2.f32 %v1855_v53 }
 0xe60   : > { %2030 = vrcp.f32 %v1381_v55  ;;  %v1393_v0 = vand.u32 2147483648, %v1381_v55  ;;  %vm1387_vm5 = vweird.f32 %v1381_v55  ;;  %v1391_v7 = vand.u32 2147483647, %v1381_v55 }
 0xe62   : > { %v1394_v10 = vor.u32 1.1754944e-38, %v1393_v0  ;;  %vm1392_vm7 = vcmp.eq.f32.partialorder %v1391_v7, 8.507059e+37 }
 0xe64   : > { %v2029_v56 = vpop.eup %2028 }
 0xe65   : > { %v1314_v59 = vadd.f32 1.0, %v2029_v56 }
 0xe66   : > { %v2031_v57 = vpop.eup %2030 }
 0xe67   : > { %2032 = vrcp.f32 %v1314_v59  ;;  %v1383_v60 = vmul.f32 %v2031_v57, %v1381_v55  ;;  %vm1388_vm4 = vweird.f32 %v2031_v57  ;;  %v1326_v15 = vand.u32 2147483648, %v1314_v59 }
 0xe68   : > { %vm1389_vm6 = vmor %vm1387_vm5, %vm1388_vm4  ;;  %vm1320_vm9 = vweird.f32 %v1314_v59  ;;  %v1324_v16 = vand.u32 2147483647, %v1314_v59 }
 0xe69   : > { %v1384_v58 = vsub.f32 1.0, %v1383_v60  ;;  %v1327_v18 = vor.u32 1.1754944e-38, %v1326_v15 }
 0xe6a   : > { %vm1325_vm12 = vcmp.eq.f32.partialorder %v1324_v16, 8.507059e+37 }
 0xe6b   : > { %v1385_v61 = vmul.f32 %v2031_v57, %v1384_v58 }
 0xe6d   : > { %v2033_v6 = vpop.eup %2032  ;;  %v1386_v63 = vadd.f32 %v2031_v57, %v1385_v61 }
 0xe6e   : > { %v1316_v62 = vmul.f32 %v2033_v6, %v1314_v59  ;;  %vm1321_vm8 = vweird.f32 %v2033_v6 }
 0xe6f   : > { %v1390_v8 = vsel %vm1389_vm6, %v2031_v57, %v1386_v63  ;;  %vm1322_vm11 = vmor %vm1320_vm9, %vm1321_vm8  ;;  %vm1625_vm6 = vcmask 130055  }
 0xe70   : > { %v1317_v4 = vsub.f32 1.0, %v1316_v62  ;;  %v1395_v2 = vsel %vm1392_vm7, %v1394_v10, %v1390_v8 }
 0xe71   : > { %v1407_v28 = vsub.f32 1.0, %v1395_v2  ;;  %v1415_v31 = vmul.f32 %v1413_v29, %v1395_v2 }
 0xe72   : > { %v1318_v12 = vmul.f32 %v2033_v6, %v1317_v4 }
 0xe74   : > { %v1319_v14 = vadd.f32 %v2033_v6, %v1318_v12 }
 0xe76   : > { %v1323_v17 = vsel %vm1322_vm11, %v2033_v6, %v1319_v14  ;;  %vm1632_vm11 = vcmask 122880  }
 0xe77   : > { %v1328_v20 = vsel %vm1325_vm12, %v1327_v18, %v1323_v17 }
 0xe78   : > { %v1341_v38 = vsub.f32 1.0, %v1328_v20  ;;  %v1347_v40 = vmul.f32 %v1328_v20, %v2658_v37 }
 0xec5   : > { %v1398_v5 = vpop.permute.xlu1 %1397 }
 0xec6   : > { %v1400_v13 = vmul.f32 %v1398_v5, %v1395_v2 }
 0xec8   : > { %1402 = vrot.lane.b32.xlu2 %v1400_v13, %s2262_s17 }
 0xece   : > { %v1332_v19 = vpop.permute.xlu0 %1331 }
 0xecf   : > { %v1334_v21 = vmul.f32 %v1332_v19, %v1328_v20 }
 0xed1   : > { %1336 = vrot.lane.b32.xlu2 %v1334_v21, %s2262_s17 }
 0xf22   : > { %v1403_v22 = vpop.permute.xlu2 %1402 }
 0xf23   : > { %v1405_v23 = vadd.f32 %v1403_v22, %v2493_v11 }
 0xf25   : > { %2034 = vtanh.f32 %v1405_v23 }
 0xf2b   : > { %v2035_v24 = vpop.eup %2034  ;;  %v1337_v25 = vpop.permute.xlu2 %1336 }
 0xf2c   : > { %v1339_v26 = vadd.f32 %v1337_v25, %v1309_v51  ;;  %1409 = vrot.lane.b32.xlu1 %v2035_v24, %s2263_s15 }
 0xf2e   : > { %2036 = vtanh.f32 %v1339_v26 }
 0xf34   : > { %v2037_v27 = vpop.eup %2036 }
 0xf35   : > { %1343 = vrot.lane.b32.xlu1 %v2037_v27, %s2263_s15 }
 0xf9e   : > { %v1410_v30 = vpop.permute.xlu1 %1409 }
 0xf9f   : > { %v1412_v33 = vmul.f32 %v1410_v30, %v1407_v28 }
 0xfa1   : > { %v2679_v34 = vadd.f32 %v1415_v31, %v1412_v33 }
 0xfa3   : > { %1418 = vrot.lane.b32.xlu2 %v2679_v34, %s2263_s15  ;;  %v1487_v35 = vrot.slane %v2679_v34, 6  ;;  %v1551_v25 = vrot.slane %v2679_v34, 7 }
 0xfa5   : > { %1488 = vrot.lane.b32.xlu0 %v1487_v35, %s2263_s15 }
 0xfa7   : > { %v1344_v36 = vpop.permute.xlu1 %1343 }
 0xfa8   : > { %v1346_v39 = vmul.f32 %v1344_v36, %v1341_v38 }
 0xfaa   : > { %v2686_v41 = vadd.f32 %v1347_v40, %v1346_v39 }
 0xfac   : > { %v1422_v32 = vrot.slane %v2686_v41, 2 }
 0xffd   : > { %v1419_v42 = vpop.permute.xlu2 %1418 }
 0xffe   : > { %v1424_v43 = vsel %vm523_vm1, %v1419_v42, %v1422_v32  ;;  %v2057_v32 = vld [vmem:[%s2774_s7] sm:$0x1] }
 0xfff   : > { %v1426_v44 = vrot.slane %v1424_v43, 6 }
0x1001   : > { %1858 = vmatmul.msk.f32.vlgmr.msrb.gmra.mxu3 %vm600_vm10, %v1426_v44 }
0x1017   : > { %v1489_v46 = vpop.permute.xlu0 %1488 }
0x1018   : > { %1860 = vmatmul.msk.f32.vlgmr.msrb.gmra.mxu2 %vm523_vm1, %v1489_v46 }
0x1084   : > { %v1446_v3 = vpop.f32.mrf.mxu3 }
0x1085   : > { %v1447_v47 = vadd.f32 %v1446_v3, %v2551_v9 }
0x1087   : > { %1469 = vrot.lane.b32.xlu1 %v1447_v47, %s2265_s14  ;;  %v1859_v50 = vmul.f32 -1.442695, %v1447_v47 }
0x1089   : > { %2038 = vpow2.f32 %v1859_v50 }
0x108f   : > { %v2039_v51 = vpop.eup %2038 }
0x1090   : > { %v1452_v52 = vadd.f32 1.0, %v2039_v51 }
0x1092   : > { %2040 = vrcp.f32 %v1452_v52  ;;  %vm1458_vm14 = vweird.f32 %v1452_v52  ;;  %v1462_v58 = vand.u32 2147483647, %v1452_v52 }
0x1094   : > { %vm1463_vm0 = vcmp.eq.f32.partialorder %v1462_v58, 8.507059e+37 }
0x1098   : > { %v2041_v53 = vpop.eup %2040 }
0x1099   : > { %v1454_v55 = vmul.f32 %v2041_v53, %v1452_v52  ;;  %vm1459_vm13 = vweird.f32 %v2041_v53 }
0x109a   : > { %vm1460_vm15 = vmor %vm1458_vm14, %vm1459_vm13 }
0x109b   : > { %v1509_v45 = vpop.f32.mrf.mxu2  ;;  %v1455_v9 = vsub.f32 1.0, %v1454_v55 }
0x109c   : > { %v1510_v37 = vadd.f32 %v2666_v48, %v1509_v45  ;;  %v1464_v48 = vand.u32 2147483648, %v1452_v52 }
0x109d   : > { %v1456_v56 = vmul.f32 %v2041_v53, %v1455_v9 }
0x109e   : > { %v1513_v49 = vrot.slane %v1510_v37, 1  ;;  %v1465_v61 = vor.u32 1.1754944e-38, %v1464_v48 }
0x109f   : > { %v1457_v60 = vadd.f32 %v2041_v53, %v1456_v56 }
0x10a0   : > { %1535 = vrot.lane.b32.xlu0 %v1513_v49, %s2261_s30  ;;  %v1515_v1 = vadd.f32 %v1513_v49, %v2493_v11 }
0x10a1   : > { %v1461_v6 = vsel %vm1460_vm15, %v2041_v53, %v1457_v60 }
0x10a2   : > { %v1861_v54 = vmul.f32 -1.442695, %v1515_v1  ;;  %v1466_v63 = vsel %vm1463_vm0, %v1465_v61, %v1461_v6 }
0x10a3   : > { %v1485_v33 = vmul.f32 %v1466_v63, %v2686_v41 }
0x10a4   : > { %2042 = vpow2.f32 %v1861_v54 }
0x10aa   : > { %v2043_v59 = vpop.eup %2042 }
0x10ab   : > { %v1519_v57 = vadd.f32 1.0, %v2043_v59  ;;  %v1635_v59 = vld [vmem:[%s2775_s8 + $0x8] sm:$0xff] }
0x10ac   : > { %1653 = vmatpush.msra.mxu1 %v1635_v59 }
0x10ad   : > { %2044 = vrcp.f32 %v1519_v57  ;;  %v1531_v2 = vand.u32 2147483648, %v1519_v57  ;;  %vm1525_vm3 = vweird.f32 %v1519_v57  ;;  %v1529_v5 = vand.u32 2147483647, %v1519_v57 }
0x10af   : > { %v1532_v14 = vor.u32 1.1754944e-38, %v1531_v2  ;;  %vm1530_vm5 = vcmp.eq.f32.partialorder %v1529_v5, 8.507059e+37 }
0x10b3   : > { %v2045_v4 = vpop.eup %2044 }
0x10b4   : > { %v1521_v7 = vmul.f32 %v2045_v4, %v1519_v57  ;;  %vm1526_vm2 = vweird.f32 %v2045_v4  ;;  %v1634_v57 = vld [vmem:[%s2775_s8] sm:$0xff] }
0x10b5   : > { %vm1527_vm4 = vmor %vm1525_vm3, %vm1526_vm2  ;;  %1654 = vmatpush.msra.mxu1 %v1634_v57 }
0x10b6   : > { %v1522_v8 = vsub.f32 1.0, %v1521_v7 }
0x10b8   : > { %v1523_v10 = vmul.f32 %v2045_v4, %v1522_v8 }
0x10ba   : > { %v1524_v12 = vadd.f32 %v2045_v4, %v1523_v10 }
0x10bc   : > { %v1528_v13 = vsel %vm1527_vm4, %v2045_v4, %v1524_v12 }
0x10bd   : > { %v1533_v16 = vsel %vm1530_vm5, %v1532_v14, %v1528_v13 }
0x10be   : > { %v1545_v24 = vsub.f32 1.0, %v1533_v16  ;;  %v1553_v27 = vmul.f32 %v1551_v25, %v1533_v16 }
0x10f9   : > { %v1470_v62 = vpop.permute.xlu1 %1469 }
0x10fa   : > { %v1472_v0 = vmul.f32 %v1470_v62, %v1466_v63 }
0x10fc   : > { %1474 = vrot.lane.b32.xlu0 %v1472_v0, %s2262_s17 }
0x1112   : > { %v1536_v15 = vpop.permute.xlu0 %1535 }
0x1113   : > { %v1538_v17 = vmul.f32 %v1536_v15, %v1533_v16 }
0x1115   : > { %1540 = vrot.lane.b32.xlu2 %v1538_v17, %s2262_s17 }
0x116e   : > { %v1475_v18 = vpop.permute.xlu0 %1474 }
0x116f   : > { %v1477_v19 = vadd.f32 %v1475_v18, %v1447_v47  ;;  %v1541_v20 = vpop.permute.xlu2 %1540 }
0x1170   : > { %v1543_v21 = vadd.f32 %v1541_v20, %v2493_v11  ;;  %v1479_v11 = vsub.f32 1.0, %v1466_v63 }
0x1171   : > { %2046 = vtanh.f32 %v1477_v19 }
0x1172   : > { %2048 = vtanh.f32 %v1543_v21 }
0x1177   : > { %v2047_v22 = vpop.eup %2046 }
0x1178   : > { %v2049_v23 = vpop.eup %2048  ;;  %1481 = vrot.lane.b32.xlu2 %v2047_v22, %s2263_s15 }
0x1179   : > { %1547 = vrot.lane.b32.xlu1 %v2049_v23, %s2263_s15 }
0x11d2   : > { %v1482_v30 = vpop.permute.xlu2 %1481 }
0x11d3   : > { %v1484_v31 = vmul.f32 %v1482_v30, %v1479_v11 }
0x11d5   : > { %v1486_v35 = vadd.f32 %v1485_v33, %v1484_v31 }
0x11d7   : > { %v1560_v36 = vrot.slane %v1486_v35, 1 }
0x11eb   : > { %v1548_v26 = vpop.permute.xlu1 %1547 }
0x11ec   : > { %v1550_v28 = vmul.f32 %v1548_v26, %v1545_v24 }
0x11ee   : > { %v1554_v29 = vadd.f32 %v1553_v27, %v1550_v28 }
0x11f0   : > { %1556 = vrot.lane.b32.xlu0 %v1554_v29, %s2263_s15 }
0x1262   : > { %v1557_v38 = vpop.permute.xlu0 %1556 }
0x1263   : > { %v1562_v39 = vsel %vm523_vm1, %v1557_v38, %v1560_v36  ;;  %1626 = vst.msk [vmem:[%s2708_s27 - $0x7] sm:$0x80] %vm1625_vm6, %v1557_v38 }
0x1264   : > { %v1564_v34 = vrot.slane %v1562_v39, 7 }
0x1266   : > { %1862 = vmatmul.msk.f32.vlgmr.msra.gmra.mxu0 %vm600_vm10, %v1564_v34 }
0x12e3   : > { %v1584_v40 = vpop.f32.mrf.mxu0 }
0x12e4   : > { %v1585_v41 = vadd.f32 %v2057_v32, %v1584_v40 }
0x12e6   : > { %1607 = vrot.lane.b32.xlu1 %v1585_v41, %s2265_s14  ;;  %v1863_v42 = vmul.f32 -1.442695, %v1585_v41  ;;  %s1867_s14 = sshll.u32 %s2351_s9, 1 }
0x12e7   : > { %s1678_s30 = scalar_lea.hbm %s2778_s11, %s1867_s14 }
0x12e8   : > { %2050 = vpow2.f32 %v1863_v42  ;;  %s1681_s13 = sshll.u32 %s1678_s30, 4  ;;  %s1682_s13 = int_to_ptr.hbm [resolvable:$true] %s1681_s13 }
0x12e9   : > { %s2192_s16 = sshra.s32 %s1682_s13, 4  ;;  %s2193_s16 = int_to_ptr.hbm [resolvable:$true] %s2192_s16 }
0x12ea   : > { %s2194_s26 = scalar_lea.hbm %s2193_s16, 2  ;;  %p2199_p10 = scmp.lt.s32.totalorder %s2193_s16, %s2778_s11 }
0x12eb   : > { %p2195_p1 = scmp.ne.s32.totalorder %s2193_s16, %s2194_s26  ;;  %p2200_p2 = scmp.lt.s32.totalorder %s2198_s29, %s2194_s26 }
0x12ed   : > { %p2196_p4 = pnand %p2195_p1, %p2413_p7  ;;  %p2201_p11 = por %p2200_p2, %p2199_p10 }
0x12ee   : > { %v2051_v43 = vpop.eup %2050 }
0x12ef   : > { %v1590_v44 = vadd.f32 1.0, %v2051_v43  ;;  %p2197_p9 = pneg %p2196_p4 }
0x12f1   : > { %2052 = vrcp.f32 %v1590_v44  ;;  %v1602_v49 = vand.u32 2147483648, %v1590_v44  ;;  %vm1596_vm10 = vweird.f32 %v1590_v44  ;;  %v1600_v50 = vand.u32 2147483647, %v1590_v44  ;;  %p2202_p12 = pnand %p2201_p11, %p2197_p9 }
0x12f3   : > { %v1603_v52 = vor.u32 1.1754944e-38, %v1602_v49  ;;  %vm1601_vm9 = vcmp.eq.f32.partialorder %v1600_v50, 8.507059e+37 }
0x12f7   : > { %v2053_v46 = vpop.eup %2052 }
0x12f8   : > { %v1592_v3 = vmul.f32 %v2053_v46, %v1590_v44  ;;  %vm1597_vm7 = vweird.f32 %v2053_v46 }
0x12f9   : > { %vm1598_vm8 = vmor %vm1596_vm10, %vm1597_vm7 }
0x12fa   : > { %v1593_v47 = vsub.f32 1.0, %v1592_v3 }
0x12fc   : > { %v1594_v45 = vmul.f32 %v2053_v46, %v1593_v47 }
0x12fe   : > { %v1595_v37 = vadd.f32 %v2053_v46, %v1594_v45 }
0x1300   : > { %v1599_v51 = vsel %vm1598_vm8, %v2053_v46, %v1595_v37 }
0x1301   : > { %v1604_v53 = vsel %vm1601_vm9, %v1603_v52, %v1599_v51 }
0x1302   : > { %v1617_v60 = vsub.f32 1.0, %v1604_v53  ;;  %v1623_v58 = vmul.f32 %v1604_v53, %v1486_v35 }
0x1358   : > { %v1608_v1 = vpop.permute.xlu1 %1607 }
0x1359   : > { %v1610_v54 = vmul.f32 %v1608_v1, %v1604_v53 }
0x135b   : > { %1612 = vrot.lane.b32.xlu2 %v1610_v54, %s2262_s17  ;;  %s1679_s17 = sshll.u32 %s2708_s27, 4  ;;  %s1680_s17 = int_to_ptr.vmem [resolvable:$true] %s1679_s17 }
0x13b5   : > { %v1613_v55 = vpop.permute.xlu2 %1612 }
0x13b6   : > { %v1615_v9 = vadd.f32 %v1613_v55, %v1585_v41 }
0x13b8   : > { %2054 = vtanh.f32 %v1615_v9 }
0x13be   : > { %v2055_v56 = vpop.eup %2054 }
0x13bf   : > { %1619 = vrot.lane.b32.xlu0 %v2055_v56, %s2263_s15 }
0x1431   : > { %v1620_v48 = vpop.permute.xlu0 %1619 }
0x1432   : > { %v1622_v6 = vmul.f32 %v1620_v48, %v1617_v60 }
0x1434   : > { %v1624_v61 = vadd.f32 %v1623_v58, %v1622_v6 }
0x1436   : > { %1628 = vrot.lane.b32.xlu1 %v1624_v61, %s2263_s15 }
0x14a8   : > { %v1629_v62 = vpop.permute.xlu1 %1628 }
0x14a9   : > { %1864 = vst.msk [vmem:[%s2708_s27 + $0x1] sm:$0x1] %vm1632_vm11, %v1629_v62  ;;  %1865 = vmatmul.msk.f32.vlgmr.msra.gmra.mxu1 %vm523_vm1, %v1629_v62 }
0x14aa   : > { %2205 = shalt.err (!%p2202_p12)
}
0x14ab   : > { %s2266_s23 = smov 1   ;;  %v1636_v63 = vld [vmem:[#allocation2] sm:$0x1]  ;;  %s481_s30 = scalar_lea.vmem %s2777_s10, %s2463_s4  ;;  %vm1659_vm1 = vcmask 0  }
0x14ac   : > { %1884 = dma.vmem_to_hbm [thread:$0]  (%p2413_p7), %s1680_s17, 32, %s1682_s13, %s1665_s6, %s2264_s24, %s2264_s24, %s2266_s23  }
0x1526   : > { %v1656_v0 = vpop.f32.mrf.mxu1 }
0x1527   : > { %v1657_v4 = vadd.f32 %v1656_v0, %v1636_v63 }
0x1529   : > { %1660 = vst.msk [vmem:[%s481_s30] sm:$0x1] %vm1659_vm1, %v1657_v4 }
0x152a PF: > { %s1702_s16 = sand.u32 1, %s2240_s19   ;;  %p2792_p13 = scmp.ge.s32.totalorder %s2252_s22, 2 }
0x152b   : > { %s1703_s18 = scalar_lea.sflag [#allocation5], %s1702_s16 }
0x152c   : > { %p1901_p0 = pnand %p2792_p13, %p2365_p6 }
0x152e   : > { %p1902_p3 = pneg %p1901_p0 }
0x1530   : > { %2235 = dma.done.wait (%p1902_p3), %s1703_s18, 32  }
0x1531   : > { %2237 = vsyncadd (%p1902_p3), %s1703_s18, 4294967264  ;;  %s2793_s4 = sld [smem:[#allocation16_spill]]  ;;  %p29_p7 = scmp.ge.s32.totalorder %s2399_s28, 4  }
0x1532   : > { %s2794_s19 = smov %s2244_s20  ;;  %s2795_s20 = smov %s2248_s21 }
0x1533   : > { %s2797_s22 = smov %s2399_s28  ;;  %31 = sbr.rel (!%p29_p7) target bundleno = 11 (0xb), region = 134 }
0x1537   : > { %s2796_s21 = smov %s2793_s4 }
0x1538   :  { %1709 = vsyncpa [#allocation4], 1 }
0x1539   :  { %1711 = vsyncpa [#allocation4 + $0x1], 1 }
0x153a   :  { %1712 = vsyncpa [#allocation7], 1 }
0x153b   :  { %1713 = vsyncpa [#allocation10], 1 }
0x153c   :  { %1714 = vsyncpa [#allocation5], 1 }
0x153d   :  { %1716 = vsyncpa [#allocation5 + $0x1], 1 }

</bundles_post_ra>
